<compile_context>
chip_gen: v6e
topology: v6e:2x2x1
jax: 0.10.0
libtpu: 0.0.40
codegen_flags: <defaults>
</compile_context>

<pallas_src>
import functools

import jax
import jax.numpy as jnp
import numpy as np
from jax.experimental import pallas as pl
from jax.experimental.pallas import tpu as pltpu

_LANE = 128   # full output slab width (one vreg lane group)
_HALF = 64    # cls scores live in lanes [0, 64), det logits in [64, 128)


def _round_up(x, m):
    return (x + m - 1) // m * m


# ---------------------------------------------------------------------------
# Kernel
# ---------------------------------------------------------------------------
def _iamil_kernel(h_ref, w1_ref, b1_ref, wbig_ref, bbig_ref, wc_ref, bc_ref,
                  out_ref, *, n_classes, d2):
    # Cast the h tile to bf16 in-kernel (VPU work, hidden under the MXU); the
    # wrapper no longer materializes a bf16 copy of h in HBM.
    h_bf = h_ref[...].astype(jnp.bfloat16)

    # det_net[0:2]: Linear(fea_dim, 512) + ReLU   (bf16 MXU, f32 accumulate)
    h1 = jnp.dot(h_bf, w1_ref[...], preferred_element_type=jnp.float32)
    h1 = jnp.maximum(h1 + b1_ref[...], 0.0)

    # Fused projection: [Wa | Wb | Wcls_pad128] -> single lane-dense matmul
    big = jnp.dot(h1.astype(jnp.bfloat16), wbig_ref[...],
                  preferred_element_type=jnp.float32) + bbig_ref[...]

    # Attn_Net_Gated: tanh / sigmoid run on the EUP (free under MXU work)
    a = jnp.tanh(big[:, :d2])
    b = jax.nn.sigmoid(big[:, d2:2 * d2])
    gated = (a * b).astype(jnp.bfloat16)

    # attention_c: Linear(d2, n_classes); weight columns are pre-placed at lane
    # offset 64 of a 128-lane slab, so `det` already sits in lanes [64, 64+C).
    det = jnp.dot(gated, wc_ref[...],
                  preferred_element_type=jnp.float32) + bc_ref[...]

    # cls_net + per-instance softmax over classes (128-lane padded slab)
    cls_logit = big[:, 2 * d2:]                       # (tn, 128)
    lane = jax.lax.broadcasted_iota(jnp.int32, cls_logit.shape, 1)
    masked = jnp.where(lane < n_classes, cls_logit, jnp.float32(-1e30))
    m = jnp.max(masked, axis=1, keepdims=True)
    e = jnp.exp(masked - m)
    cls_score = e / jnp.sum(e, axis=1, keepdims=True)

    # Single unmasked full-lane (tn, 128) store: cls | det.
    out_ref[...] = jnp.where(lane < _HALF, cls_score, det)


# ---------------------------------------------------------------------------
# One-time weight preparation (hoisted out of the per-bag forward call)
# ---------------------------------------------------------------------------
def prepare_params(params):
    C = params["wcls"].shape[1]
    D1 = params["w1"].shape[1]            # 512
    D2 = params["wa"].shape[1]            # 256 ('small') / 384 ('big')
    assert C <= _HALF, "n_classes must fit in 64 output lanes"

    f32 = jnp.float32
    wcls_pad = jnp.zeros((D1, _LANE), f32).at[:, :C].set(params["wcls"])
    bcls_pad = jnp.zeros((1, _LANE), f32).at[:, :C].set(params["bcls"])
    wbig = jnp.concatenate([params["wa"], params["wb"], wcls_pad], axis=1)
    bbig = jnp.concatenate([params["ba"], params["bb"], bcls_pad], axis=1)
    # attention_c weights: real columns placed at lane offset 64
    wc_pad = jnp.zeros((D2, _LANE), f32).at[:, _HALF:_HALF + C].set(params["wc"])
    bc_pad = jnp.zeros((1, _LANE), f32).at[:, _HALF:_HALF + C].set(params["bc"])

    return {
        "w1": params["w1"].astype(jnp.bfloat16),
        "b1": params["b1"].astype(f32),
        "wbig": wbig.astype(jnp.bfloat16),
        "bbig": bbig.astype(f32),
        "wc": wc_pad.astype(jnp.bfloat16),
        "bc": bc_pad.astype(f32),
        "n_classes": C, "d1": D1, "d2": D2,
    }


# ---------------------------------------------------------------------------
# Per-generation tile / VMEM defaults
# ---------------------------------------------------------------------------
def _tile_defaults():
    try:
        kind = jax.devices()[0].device_kind.lower()
    except Exception:
        kind = ""
    if "v6" in kind or "trillium" in kind:
        return 2048, 80 * 1024 * 1024       # v6e: 128 MiB VMEM -> grow the tile
    if "v7" in kind or "7x" in kind:
        return 2048, 56 * 1024 * 1024       # v7x: 64 MiB VMEM -> cap the tile
    if "v5e" in kind or "v5 lite" in kind or "v5lite" in kind:
        return 1024, 64 * 1024 * 1024       # v5e: MXU-bound, modest tile
    return 512, None                        # unknown chip: stay conservative


# ---------------------------------------------------------------------------
# Forward
# ---------------------------------------------------------------------------
def iamil_forward(h, params, *, tile_n=None, epsilon=1e-10):
    """Returns (final_score, Y_prob, Y_hat, ref_score, results_dict)."""
    if "wbig" not in params:                # allow raw params too
        params = prepare_params(params)

    N, F = h.shape
    C = params["n_classes"]
    D1, D2 = params["d1"], params["d2"]
    WBIG = 2 * D2 + _LANE                   # 640 for the 'small' config

    tn_pref, vmem_limit = _tile_defaults()
    if tile_n is not None:
        tn_pref = tile_n
    tn = min(tn_pref, _round_up(N, 8))
    if N >= 16:
        # keep >= 2 grid steps (feeds both TensorCores on v7x, overlaps DMA)
        tn = min(tn, _round_up(pl.cdiv(N, 2), 8))
    tn = max(tn, 8)
    grid = (pl.cdiv(N, tn),)                # partial last block handled by Pallas

    flops = 2 * N * (F * D1 + D1 * WBIG + D2 * _LANE)
    transcendentals = N * (2 * D2 + _LANE)
    bytes_accessed = (N * F * h.dtype.itemsize
                      + (F * D1 + D1 * WBIG + D2 * _LANE) * 2
                      + (D1 + WBIG + _LANE) * 4
                      + N * _LANE * 4)

    def weight_spec(shape):
        # constant index_map + single buffer: weights stay VMEM resident and
        # the dead second pipeline buffer is reclaimed.
        return pl.BlockSpec(shape, lambda i: (0, 0), pipeline_mode=pl.Buffered(1))

    out = pl.pallas_call(
        functools.partial(_iamil_kernel, n_classes=C, d2=D2),
        out_shape=jax.ShapeDtypeStruct((N, _LANE), jnp.float32),
        grid=grid,
        in_specs=[
            pl.BlockSpec((tn, F), lambda i: (i, 0)),   # h tile (pipelined)
            weight_spec((F, D1)),                      # W1
            weight_spec((1, D1)),                      # b1
            weight_spec((D1, WBIG)),                   # [Wa | Wb | Wcls_pad]
            weight_spec((1, WBIG)),                    # [ba | bb | bcls_pad]
            weight_spec((D2, _LANE)),                  # Wc (at lane offset 64)
            weight_spec((1, _LANE)),                   # bc (at lane offset 64)
        ],
        out_specs=pl.BlockSpec((tn, _LANE), lambda i: (i, 0)),
        compiler_params=pltpu.CompilerParams(
            dimension_semantics=("parallel",),
            vmem_limit_bytes=vmem_limit),
        cost_estimate=pl.CostEstimate(flops=flops,
                                      transcendentals=transcendentals,
                                      bytes_accessed=bytes_accessed),
    )(h, params["w1"], params["b1"], params["wbig"], params["bbig"],
      params["wc"], params["bc"])

    cls_score = out[:, :C]
    det_logit = out[:, _HALF:_HALF + C]

    # Cross-tile (axis-0, over instances) softmax + reduction on N*C floats:
    # done in plain JAX so the N grid axis stays parallel.
    det_score = jax.nn.softmax(det_logit, axis=0)
    final_score = cls_score * det_score
    Y_prob = jnp.clip(jnp.sum(final_score, axis=0), epsilon, 1.0 - epsilon)
    Y_hat = jnp.argmax(Y_prob)[None].astype(jnp.int32)
    ref_score = final_score
    results_dict = {}
    return final_score, Y_prob, Y_hat, ref_score, results_dict


# ---------------------------------------------------------------------------
# Test harness
# ---------------------------------------------------------------------------
def _make_params(key, fea_dim=1024, d1=512, d2=256, n_classes=2):
    ks = jax.random.split(key, 5)
    s = 0.02
    return {
        "w1":   jax.random.normal(ks[0], (fea_dim, d1), jnp.float32) * s,
        "b1":   jnp.zeros((1, d1), jnp.float32),
        "wa":   jax.random.normal(ks[1], (d1, d2), jnp.float32) * s,
        "ba":   jnp.zeros((1, d2), jnp.float32),
        "wb":   jax.random.normal(ks[2], (d1, d2), jnp.float32) * s,
        "bb":   jnp.zeros((1, d2), jnp.float32),
        "wc":   jax.random.normal(ks[3], (d2, n_classes), jnp.float32) * s,
        "bc":   jnp.zeros((1, n_classes), jnp.float32),
        "wcls": jax.random.normal(ks[4], (d1, n_classes), jnp.float32) * s,
        "bcls": jnp.zeros((1, n_classes), jnp.float32),
    }


def _reference(h, p):
    """Pure-JAX reference mirroring the kernel's bf16-matmul / f32-math recipe."""
    b16 = lambda x: x.astype(jnp.bfloat16)
    f32 = jnp.float32
    h1 = jnp.maximum(
        jnp.dot(b16(h), b16(p["w1"]), preferred_element_type=f32) + p["b1"], 0.0)
    a = jnp.tanh(
        jnp.dot(b16(h1), b16(p["wa"]), preferred_element_type=f32) + p["ba"])
    b = jax.nn.sigmoid(
        jnp.dot(b16(h1), b16(p["wb"]), preferred_element_type=f32) + p["bb"])
    det_logit = jnp.dot(b16(a * b), b16(p["wc"]),
                        preferred_element_type=f32) + p["bc"]
    cls_logit = jnp.dot(b16(h1), b16(p["wcls"]),
                        preferred_element_type=f32) + p["bcls"]
    cls_score = jax.nn.softmax(cls_logit, axis=1)
    det_score = jax.nn.softmax(det_logit, axis=0)
    final = cls_score * det_score
    y_prob = jnp.clip(jnp.sum(final, axis=0), 1e-10, 1.0 - 1e-10)
    return final, y_prob


if __name__ == "__main__":
    key = jax.random.PRNGKey(0)
    k_h, k_p = jax.random.split(key)

    N, FEA_DIM, N_CLASSES = 64, 1024, 2
    h = jax.random.normal(k_h, (N, FEA_DIM), jnp.float32)
    raw_params = _make_params(k_p, fea_dim=FEA_DIM, n_classes=N_CLASSES)

    fused_params = prepare_params(raw_params)       # one-time weight prep
    jax.block_until_ready(fused_params)

    final_score, Y_prob, Y_hat, ref_score, results_dict = iamil_forward(
        h, fused_params)
    jax.block_until_ready((final_score, Y_prob, Y_hat, ref_score))

    ref_final, ref_yprob = _reference(h, raw_params)
    assert np.allclose(np.asarray(final_score), np.asarray(ref_final),
                       atol=1e-4, rtol=1e-4)
    assert np.allclose(np.asarray(Y_prob), np.asarray(ref_yprob),
                       atol=1e-4, rtol=1e-4)
    assert final_score.shape == (N, N_CLASSES)
    assert Y_prob.shape == (N_CLASSES,)
    assert Y_hat.shape == (1,)
    assert np.asarray(Y_hat)[0] == int(np.argmax(np.asarray(ref_yprob)))

    print("KERNEL_OK")
</pallas_src>

<mosaic_0001>
module attributes {stable_mosaic.version = 11 : i64} {
  func.func @_iamil_kernel(%arg0: i32, %arg1: memref<32x1024xf32, #tpu.memory_space<vmem>>, %arg2: memref<1024x512xbf16, #tpu.memory_space<vmem>>, %arg3: memref<1x512xf32, #tpu.memory_space<vmem>>, %arg4: memref<512x640xbf16, #tpu.memory_space<vmem>>, %arg5: memref<1x640xf32, #tpu.memory_space<vmem>>, %arg6: memref<256x128xbf16, #tpu.memory_space<vmem>>, %arg7: memref<1x128xf32, #tpu.memory_space<vmem>>, %arg8: memref<32x128xf32, #tpu.memory_space<vmem>>) attributes {dimension_semantics = [#tpu.dimension_semantics<parallel>], iteration_bounds = array<i64: 2>, scalar_prefetch = 0 : i64, scratch_operands = 0 : i64, tpu.core_type = #tpu.core_type<tc>, window_params = [{transform_indices = @transform_0, window_bounds = array<i64: 32, 1024>}, {pipeline_mode = #tpu.pipeline_mode<synchronous>, transform_indices = @transform_1, window_bounds = array<i64: 1024, 512>}, {pipeline_mode = #tpu.pipeline_mode<synchronous>, transform_indices = @transform_2, window_bounds = array<i64: 1, 512>}, {pipeline_mode = #tpu.pipeline_mode<synchronous>, transform_indices = @transform_3, window_bounds = array<i64: 512, 640>}, {pipeline_mode = #tpu.pipeline_mode<synchronous>, transform_indices = @transform_4, window_bounds = array<i64: 1, 640>}, {pipeline_mode = #tpu.pipeline_mode<synchronous>, transform_indices = @transform_5, window_bounds = array<i64: 256, 128>}, {pipeline_mode = #tpu.pipeline_mode<synchronous>, transform_indices = @transform_6, window_bounds = array<i64: 1, 128>}, {transform_indices = @transform_7, window_bounds = array<i64: 32, 128>}]} {
    %c0 = arith.constant 0 : index
    %c0_0 = arith.constant 0 : index
    %0 = vector.load %arg1[%c0, %c0_0] : memref<32x1024xf32, #tpu.memory_space<vmem>>, vector<32x1024xf32>
    %1 = arith.truncf %0 : vector<32x1024xf32> to vector<32x1024xbf16>
    %c0_1 = arith.constant 0 : index
    %c0_2 = arith.constant 0 : index
    %2 = vector.load %arg2[%c0_1, %c0_2] : memref<1024x512xbf16, #tpu.memory_space<vmem>>, vector<1024x512xbf16>
    %cst = arith.constant dense<0.000000e+00> : vector<32x512xf32>
    %3 = tpu.matmul %1, %2, %cst {dimension_numbers = #tpu.dot_dimension_numbers<[1], [0], [0], [1], [0, 0, 1, 1], [], []>} : vector<32x1024xbf16>, vector<1024x512xbf16>, vector<32x512xf32> -> vector<32x512xf32>
    %c0_3 = arith.constant 0 : index
    %c0_4 = arith.constant 0 : index
    %4 = vector.load %arg3[%c0_3, %c0_4] : memref<1x512xf32, #tpu.memory_space<vmem>>, vector<1x512xf32>
    %5 = vector.broadcast %4 : vector<1x512xf32> to vector<32x512xf32>
    %6 = arith.addf %3, %5 : vector<32x512xf32>
    %cst_5 = arith.constant 0.000000e+00 : f32
    %7 = vector.broadcast %cst_5 : f32 to vector<32x512xf32>
    %8 = arith.maximumf %6, %7 : vector<32x512xf32>
    %9 = arith.truncf %8 : vector<32x512xf32> to vector<32x512xbf16>
    %c0_6 = arith.constant 0 : index
    %c0_7 = arith.constant 0 : index
    %10 = vector.load %arg4[%c0_6, %c0_7] : memref<512x640xbf16, #tpu.memory_space<vmem>>, vector<512x640xbf16>
    %cst_8 = arith.constant dense<0.000000e+00> : vector<32x640xf32>
    %11 = tpu.matmul %9, %10, %cst_8 {dimension_numbers = #tpu.dot_dimension_numbers<[1], [0], [0], [1], [0, 0, 1, 1], [], []>} : vector<32x512xbf16>, vector<512x640xbf16>, vector<32x640xf32> -> vector<32x640xf32>
    %c0_9 = arith.constant 0 : index
    %c0_10 = arith.constant 0 : index
    %12 = vector.load %arg5[%c0_9, %c0_10] : memref<1x640xf32, #tpu.memory_space<vmem>>, vector<1x640xf32>
    %13 = vector.broadcast %12 : vector<1x640xf32> to vector<32x640xf32>
    %14 = arith.addf %11, %13 : vector<32x640xf32>
    %15 = vector.extract_strided_slice %14 {offsets = [0, 0], sizes = [32, 256], strides = [1, 1]} : vector<32x640xf32> to vector<32x256xf32>
    %16 = math.tanh %15 : vector<32x256xf32>
    %17 = vector.extract_strided_slice %14 {offsets = [0, 256], sizes = [32, 256], strides = [1, 1]} : vector<32x640xf32> to vector<32x256xf32>
    %18 = arith.negf %17 : vector<32x256xf32>
    %19 = math.exp %18 : vector<32x256xf32>
    %cst_11 = arith.constant 1.000000e+00 : f32
    %20 = vector.broadcast %cst_11 : f32 to vector<32x256xf32>
    %21 = arith.addf %20, %19 : vector<32x256xf32>
    %22 = arith.divf %20, %21 : vector<32x256xf32>
    %23 = arith.mulf %16, %22 : vector<32x256xf32>
    %24 = arith.truncf %23 : vector<32x256xf32> to vector<32x256xbf16>
    %c0_12 = arith.constant 0 : index
    %c0_13 = arith.constant 0 : index
    %25 = vector.load %arg6[%c0_12, %c0_13] : memref<256x128xbf16, #tpu.memory_space<vmem>>, vector<256x128xbf16>
    %cst_14 = arith.constant dense<0.000000e+00> : vector<32x128xf32>
    %26 = tpu.matmul %24, %25, %cst_14 {dimension_numbers = #tpu.dot_dimension_numbers<[1], [0], [0], [1], [0, 0, 1, 1], [], []>} : vector<32x256xbf16>, vector<256x128xbf16>, vector<32x128xf32> -> vector<32x128xf32>
    %c0_15 = arith.constant 0 : index
    %c0_16 = arith.constant 0 : index
    %27 = vector.load %arg7[%c0_15, %c0_16] : memref<1x128xf32, #tpu.memory_space<vmem>>, vector<1x128xf32>
    %28 = vector.broadcast %27 : vector<1x128xf32> to vector<32x128xf32>
    %29 = arith.addf %26, %28 : vector<32x128xf32>
    %30 = vector.extract_strided_slice %14 {offsets = [0, 512], sizes = [32, 128], strides = [1, 1]} : vector<32x640xf32> to vector<32x128xf32>
    %31 = tpu.iota {dimensions = array<i32: 1>} : vector<32x128xi32>
    %c2_i32 = arith.constant 2 : i32
    %32 = vector.broadcast %c2_i32 : i32 to vector<32x128xi32>
    %33 = arith.cmpi slt, %31, %32 : vector<32x128xi32>
    %cst_17 = arith.constant -1.000000e+30 : f32
    %34 = vector.broadcast %cst_17 : f32 to vector<32x128xf32>
    %35 = arith.select %33, %30, %34 : vector<32x128xi1>, vector<32x128xf32>
    %cst_18 = arith.constant dense<0xFF800000> : vector<32xf32>
    %36 = vector.multi_reduction <maximumf>, %35, %cst_18 [1] : vector<32x128xf32> to vector<32xf32>
    %37 = vector.shape_cast %36 : vector<32xf32> to vector<32x1xf32>
    %38 = vector.broadcast %37 : vector<32x1xf32> to vector<32x128xf32>
    %39 = arith.subf %35, %38 : vector<32x128xf32>
    %40 = math.exp %39 : vector<32x128xf32>
    %cst_19 = arith.constant dense<0.000000e+00> : vector<32xf32>
    %41 = vector.multi_reduction <add>, %40, %cst_19 [1] : vector<32x128xf32> to vector<32xf32>
    %42 = vector.shape_cast %41 : vector<32xf32> to vector<32x1xf32>
    %43 = vector.broadcast %42 : vector<32x1xf32> to vector<32x128xf32>
    %44 = arith.divf %40, %43 : vector<32x128xf32>
    %c64_i32 = arith.constant 64 : i32
    %45 = vector.broadcast %c64_i32 : i32 to vector<32x128xi32>
    %46 = arith.cmpi slt, %31, %45 : vector<32x128xi32>
    %47 = arith.select %46, %44, %29 : vector<32x128xi1>, vector<32x128xf32>
    %c0_20 = arith.constant 0 : index
    %c0_21 = arith.constant 0 : index
    %48 = vector.load %arg8[%c0_20, %c0_21] : memref<32x128xf32, #tpu.memory_space<vmem>>, vector<32x128xf32>
    tpu.vector_store %arg8[%c0_20, %c0_21], %47 {strides = array<i32>} : memref<32x128xf32, #tpu.memory_space<vmem>>, vector<32x128xf32>,
    return
  }
  func.func @transform_0(%arg0: i32) -> (i32, i32) {
    %c0_i32 = arith.constant 0 : i32
    %c0_i32_0 = arith.constant 0 : i32
    return %arg0, %c0_i32 : i32, i32
  }
  func.func @transform_1(%arg0: i32) -> (i32, i32) {
    %c0_i32 = arith.constant 0 : i32
    %c0_i32_0 = arith.constant 0 : i32
    %c0_i32_1 = arith.constant 0 : i32
    return %c0_i32, %c0_i32_0 : i32, i32
  }
  func.func @transform_2(%arg0: i32) -> (i32, i32) {
    %c0_i32 = arith.constant 0 : i32
    %c0_i32_0 = arith.constant 0 : i32
    %c0_i32_1 = arith.constant 0 : i32
    return %c0_i32, %c0_i32_0 : i32, i32
  }
  func.func @transform_3(%arg0: i32) -> (i32, i32) {
    %c0_i32 = arith.constant 0 : i32
    %c0_i32_0 = arith.constant 0 : i32
    %c0_i32_1 = arith.constant 0 : i32
    return %c0_i32, %c0_i32_0 : i32, i32
  }
  func.func @transform_4(%arg0: i32) -> (i32, i32) {
    %c0_i32 = arith.constant 0 : i32
    %c0_i32_0 = arith.constant 0 : i32
    %c0_i32_1 = arith.constant 0 : i32
    return %c0_i32, %c0_i32_0 : i32, i32
  }
  func.func @transform_5(%arg0: i32) -> (i32, i32) {
    %c0_i32 = arith.constant 0 : i32
    %c0_i32_0 = arith.constant 0 : i32
    %c0_i32_1 = arith.constant 0 : i32
    return %c0_i32, %c0_i32_0 : i32, i32
  }
  func.func @transform_6(%arg0: i32) -> (i32, i32) {
    %c0_i32 = arith.constant 0 : i32
    %c0_i32_0 = arith.constant 0 : i32
    %c0_i32_1 = arith.constant 0 : i32
    return %c0_i32, %c0_i32_0 : i32, i32
  }
  func.func @transform_7(%arg0: i32) -> (i32, i32) {
    %c0_i32 = arith.constant 0 : i32
    %c0_i32_0 = arith.constant 0 : i32
    return %arg0, %c0_i32 : i32, i32
  }
}

</mosaic_0001>

<bundles_post_ra>
// kernel: tpu_custom_call.1
= control target key start
LH: loop header
LB: loop body
LE: loop exit
PB: predicated region body
PF: predicated region fallthrough
CT: control target
= control target key end

     0   :  { %s6302_s0 = inlined_call_operand.hbm [shape: f32[64,1024], index: 0, kind: input, shape index: {}]   ;;  %s6303_s1 = inlined_call_operand.hbm [shape: bf16[1024,512], index: 1, kind: input, shape index: {}]   ;;  %s6304_s2 = inlined_call_operand.hbm [shape: f32[1,512], index: 2, kind: input, shape index: {}]   ;;  %s6305_s3 = inlined_call_operand.hbm [shape: bf16[512,640], index: 3, kind: input, shape index: {}]   ;;  %s6306_s4 = inlined_call_operand.vmem [shape: f32[1,640], index: 4, kind: input, shape index: {}]   ;;  %s6307_s5 = inlined_call_operand.hbm [shape: bf16[256,128], index: 5, kind: input, shape index: {}]   ;;  %s6308_s6 = inlined_call_operand.vmem [shape: f32[1,128], index: 6, kind: input, shape index: {}]   ;;  %s6309_s7 = inlined_call_operand.hbm [shape: f32[64,128], index: 7, kind: output, shape index: {}]  }
   0x1   :  { %6315 = sst [smem:[#allocation16_spill]] %s6303_s1 }
   0x2   :  { %12 = vsyncpa [#allocation3], 0 }
   0x3   :  { %14 = vsyncpa [#allocation3 + $0x1], 0 }
   0x4   :  { %15 = vsyncpa [#allocation6], 0 }
   0x5   :  { %16 = vsyncpa [#allocation9], 0 }
   0x6   :  { %17 = vsyncpa [#allocation4], 0 }
   0x7   :  { %19 = vsyncpa [#allocation4 + $0x1], 0  ;;  %s5813_s24 = smov 0   ;;  %s5815_s25 = smov 0  }
   0x8   :  { %s5817_s26 = smov 0   ;;  %s5819_s27 = smov 0  }
   0x9 LB: > { %s5834_s28 = sadd.s32 4294967295, %s5756_s27   ;;  %s4201_s29 = sadd.s32 4294967294, %s5756_s27   ;;  %s5756_s27 = sphi %s5819_s27, %s6337_s27   ;;  %s5752_s26 = sphi %s5817_s26, %s6336_s26   ;;  %s5748_s25 = sphi %s5815_s25, %s6335_s25   ;;  %s5744_s24 = sphi %s5813_s24, %s6334_s24  }
   0xa   : > { %p45_p0 = scmp.ne.s32.totalorder %s5748_s25, %s5744_s24  ;;  %p6310_p1 = scmp.eq.s32.totalorder %s5834_s28, 0 }
   0xb   : > { %p201_p3 = scmp.eq.s32.totalorder %s4201_s29, 1  ;;  %p4202_p5 = scmp.ge.s32.totalorder %s5756_s27, 1 }
   0xc   : > { %p5843_p4 = por %p6310_p1, %p45_p0  ;;  %p208_p7 = scmp.lt.s32.totalorder %s5756_s27, 3 }
   0xd   : > { %p5848_p6 = por %p201_p3, %p45_p0  ;;  %s5758_s10 = smov [#allocation5]  }
   0xe   : > { %s6316_s30 = scalar_select %p5843_p4, 1, 0 }
   0xf   : > { %s6317_s8 = scalar_select %p5848_p6, 1, 0 }
  0x10   : > { %p5853_p8 = pnand %p4202_p5, %p208_p7  ;;  %s220_s11 = sshll.u32 %s5758_s10, 4  ;;  %s221_s11 = int_to_ptr.vmem [resolvable:$true] %s220_s11 }
  0x11   : > { %s5759_s13 = smov [#allocation8]   ;;  %s5563_s15 = scalar_lea.vmem %s221_s11, 32768 }
  0x12   : > { %s6318_s9 = scalar_select %p5853_p8, 1, 0 }
  0x13   : > { %p4788_p9 = pneg %p5853_p8  ;;  %s244_s14 = sshll.u32 %s5759_s13, 4  ;;  %s245_s14 = int_to_ptr.vmem [resolvable:$true] %s244_s14 }
  0x14   : > { %p5564_p13 = scmp.ne.s32.totalorder %s221_s11, %s5563_s15  ;;  %p5571_p5 = scmp.lt.s32.totalorder %s221_s11, %s221_s11 }
  0x15   : > { %p5862_p11 = pnand %p4788_p9, %p6310_p1  ;;  %p5572_p7 = scmp.lt.s32.totalorder %s5563_s15, %s5563_s15 }
  0x17   : > { %p5554_p12 = pneg %p5862_p11  ;;  %p5573_p10 = por %p5572_p7, %p5571_p5 }
  0x19   : > { %p5566_p0 = pnand %p5564_p13, %p5554_p12 }
  0x1b   : > { %p5567_p3 = pneg %p5566_p0 }
  0x1d   : > { %p5574_p9 = pnand %p5573_p10, %p5567_p3 }
  0x1f   : > { %5577 = shalt.err (!%p5574_p9)
}
  0x20   : > { %s5760_s16 = smov 256   ;;  %s5761_s17 = smov 16  }
  0x21   : > { %s6320_s1 = sld [smem:[#allocation16_spill]]  ;;  %s5589_s20 = scalar_lea.vmem %s245_s14, 20480 }
  0x22   : > { %p5590_p1 = scmp.ne.s32.totalorder %s245_s14, %s5589_s20  ;;  %p5597_p2 = scmp.lt.s32.totalorder %s245_s14, %s245_s14 }
  0x23   : > { %p5598_p6 = scmp.lt.s32.totalorder %s5589_s20, %s5589_s20 }
  0x24   : > { %p5592_p13 = pnand %p5590_p1, %p5554_p12 }
  0x25   : > { %p5599_p5 = por %p5598_p6, %p5597_p2 }
  0x26   : > { %p5593_p0 = pneg %p5592_p13 }
  0x27   : > { %4791 = dma.hbm_to_vmem [thread:$0]  (!%p5862_p11), %s6320_s1, 32768, %s221_s11, [#allocation6], %s5760_s16, %s5760_s16, %s5761_s17  }
  0x28   : > { %p5600_p10 = pnand %p5599_p5, %p5593_p0 }
  0x2a   : > { %5603 = shalt.err (!%p5600_p10)
}
  0x2b   : > { %s5762_s21 = smov 320   ;;  %s5763_s22 = smov 20  }
  0x2c   : > { %4797 = dma.hbm_to_vmem [thread:$0]  (!%p5862_p11), %s6305_s3, 20480, %s245_s14, [#allocation9], %s5762_s21, %s5762_s21, %s5763_s22  }
  0x2d   : > { %s5764_s10 = smov [#allocation7]   ;;  %s5765_s13 = smov [#allocation10]  }
  0x2e   : > { %s234_s11 = sshll.u32 %s5764_s10, 4  ;;  %s260_s15 = sshll.u32 %s5765_s13, 4  ;;  %s235_s11 = int_to_ptr.vmem [resolvable:$true] %s234_s11  ;;  %s261_s15 = int_to_ptr.vmem [resolvable:$true] %s260_s15 }
  0x2f   : > { %s5615_s16 = scalar_lea.vmem %s235_s11, 64  ;;  %p5623_p3 = scmp.lt.s32.totalorder %s235_s11, %s235_s11 }
  0x30   : > { %p5616_p1 = scmp.ne.s32.totalorder %s235_s11, %s5615_s16  ;;  %p5624_p7 = scmp.lt.s32.totalorder %s5615_s16, %s5615_s16 }
  0x32   : > { %p5618_p2 = pnand %p5616_p1, %p5554_p12  ;;  %p5625_p9 = por %p5624_p7, %p5623_p3 }
  0x34   : > { %p5619_p6 = pneg %p5618_p2 }
  0x36   : > { %p5626_p13 = pnand %p5625_p9, %p5619_p6 }
  0x38   : > { %5629 = shalt.err (!%p5626_p13)
}
  0x39   : > { %4794 = dma.hbm_to_vmem [thread:$0]  (!%p5862_p11), %s6304_s2, 64, %s235_s11, [#allocation6]  }
  0x3a   : > { %s5641_s18 = scalar_lea.vmem %s261_s15, 2048  ;;  %p5649_p1 = scmp.lt.s32.totalorder %s261_s15, %s261_s15 }
  0x3b   : > { %p5642_p0 = scmp.ne.s32.totalorder %s261_s15, %s5641_s18  ;;  %p5650_p2 = scmp.lt.s32.totalorder %s5641_s18, %s5641_s18 }
  0x3d   : > { %p5644_p5 = pnand %p5642_p0, %p5554_p12  ;;  %p5651_p4 = por %p5650_p2, %p5649_p1 }
  0x3f   : > { %p5645_p10 = pneg %p5644_p5 }
  0x41   : > { %p5652_p8 = pnand %p5651_p4, %p5645_p10 }
  0x43   : > { %5655 = shalt.err (!%p5652_p8)
}
  0x44   : > { %s6313_s19 = smov 64   ;;  %s5767_s20 = smov 4  }
  0x45   : > { %4800 = dma.hbm_to_vmem [thread:$0]  (!%p5862_p11), %s6307_s5, 2048, %s261_s15, [#allocation9], %s6313_s19, %s6313_s19, %s5767_s20  }
  0x46   : > { %s5903_s23 = sadd.s32 1, %s5756_s27   ;;  %s32_s10 = sadd.s32 1, %s5752_s26 }
  0x47   : > { %s29_s29 = ssub.s32 %s5756_s27, %s5903_s23  ;;  %p39_p8 = scmp.ne.s32.totalorder %s5752_s26, %s5748_s25 }
  0x48   : > { %p30_p4 = scmp.eq.s32.totalorder %s29_s29, 0  ;;  %p40_p12 = scmp.eq.s32.totalorder %s5756_s27, 0 }
  0x49   : > { %p6321_p3 = scmp.eq.s32.totalorder %s5834_s28, 1  ;;  %p4813_p9 = scmp.lt.s32.totalorder %s5756_s27, 2 }
  0x4a   : > { %s5912_s11 = scalar_select %p30_p4, %s5752_s26, %s32_s10  }
  0x4b   : > { %p41_p6 = por %p40_p12, %p39_p8  ;;  %p5916_p7 = por %p6321_p3, %p39_p8 }
  0x4c   : > { %s277_s13 = sand.u32 1, %s5752_s26   ;;  %s4666_s15 = sshll.u32 %s5756_s27, 12 }
  0x4d   : > { %s6322_s12 = scalar_select %p5916_p7, 1, 0 }
  0x4e   : > { %s4208_s16 = sshll.u32 %s277_s13, 8  ;;  %s5926_s18 = scalar_lea.hbm %s6302_s0, %s4666_s15 }
  0x4f   : > { %s281_s20 = scalar_lea.vmem [#allocation2], %s4208_s16  ;;  %p5930_p11 = pnand %p4813_p9, %p41_p6 }
  0x50   : > { %s289_s21 = sshll.u32 %s281_s20, 4  ;;  %s5934_s29 = scalar_lea.sflag [#allocation3], %s277_s13  ;;  %s5928_s21 = int_to_ptr.vmem [resolvable:$true] %s289_s21 }
  0x51   : > { %s5656_s10 = scalar_lea.hbm %s5926_s18, 4096  ;;  %p5658_p0 = pneg %p5930_p11 }
  0x52   : > { %p5657_p13 = scmp.ne.s32.totalorder %s5926_s18, %s5656_s10  ;;  %s5661_s16 = scalar_lea.hbm %s6302_s0, 8192 }
  0x53   : > { %p5662_p1 = scmp.lt.s32.totalorder %s5926_s18, %s6302_s0  ;;  %p5663_p2 = scmp.lt.s32.totalorder %s5661_s16, %s5656_s10 }
  0x54   : > { %p5659_p5 = pnand %p5658_p0, %p5657_p13 }
  0x55   : > { %p5664_p4 = por %p5663_p2, %p5662_p1 }
  0x56   : > { %p5660_p10 = pneg %p5659_p5 }
  0x58   : > { %p5665_p8 = pnand %p5664_p4, %p5660_p10 }
  0x5a   : > { %5668 = shalt.err (!%p5665_p8)
}
  0x5b   : > { %s5669_s13 = scalar_lea.vmem %s5928_s21, 4096  ;;  %s5768_s19 = smov [#allocation2]  }
  0x5c   : > { %p5670_p12 = scmp.ne.s32.totalorder %s5928_s21, %s5669_s13  ;;  %s5674_s1 = sshll.u32 %s5768_s19, 4  ;;  %s5675_s1 = int_to_ptr.vmem [resolvable:$false] %s5674_s1 }
  0x5d   : > { %s5676_s15 = scalar_lea.vmem %s5675_s1, 8192  ;;  %p5677_p9 = scmp.lt.s32.totalorder %s5928_s21, %s5675_s1 }
  0x5e   : > { %p5672_p6 = pnand %p5670_p12, %p5658_p0  ;;  %p5678_p13 = scmp.lt.s32.totalorder %s5676_s15, %s5669_s13 }
  0x60   : > { %p5673_p3 = pneg %p5672_p6  ;;  %p5679_p5 = por %p5678_p13, %p5677_p9 }
  0x62   : > { %p5680_p7 = pnand %p5679_p5, %p5673_p3 }
  0x64   : > { %5683 = shalt.err (!%p5680_p7)
}
  0x65   : > { %s5769_s10 = smov 1024   ;;  %s6324_s14 = smov 64  }
  0x66   : > { %4804 = dma.hbm_to_vmem [thread:$0]  (!%p5930_p11), %s5926_s18, 4096, %s5928_s21, %s5934_s29, %s5769_s10, %s5769_s10, %s6324_s14  }
  0x67   : > { %p6325_p0 = scmp.ne.s32.totalorder %s6318_s9, 0 }
  0x68   : > { %s5959_s19 = sand.u32 (!%p6325_p0), 1, %s5748_s25   ;;  %p6326_p7 = scmp.ne.s32.totalorder (!%p6325_p0), %s6316_s30, 0 }
  0x69   : > { %301 = sbr.rel (%p6325_p0) target bundleno = 1216 (0x4c0), region = 48  ;;  %s4213_s1 = sshll.u32 (!%p6325_p0), %s5959_s19, 8 }
  0x6a   : > { %s304_s16 = scalar_lea.sflag (!%p6325_p0), [#allocation3], %s5959_s19  ;;  %s5963_s17 = scalar_lea.vmem (!%p6325_p0), [#allocation2], %s4213_s1 }
  0x6e   : > { %5727 = dma.done.wait (%p6326_p7), %s304_s16, 4096  }
  0x6f   : > { %5729 = vsyncadd (%p6326_p7), %s304_s16, 4294963200  ;;  %p6327_p11 = scmp.eq.s32.totalorder %s5834_s28, 0 }
  0x71   : > { %5731 = dma.done.wait (%p6327_p11), [#allocation6], 32832   ;;  %p6328_p10 = pmov %p6327_p11 }
  0x73   : > { %5733 = vsyncadd (%p6328_p10), [#allocation6], 4294934464  ;;  %p6329_p1 = pmov %p6328_p10 }
  0x75   : > { %5735 = dma.done.wait (%p6329_p1), [#allocation9], 22528   ;;  %p6330_p2 = pmov %p6329_p1 }
  0x76   : > { %v4864_v0 = vld [vmem:[#allocation5 + $0xe4] ss:$16 sps:$4 sm:$0xff]   ;;  %v4868_v2 = vld [vmem:[#allocation5 + $0xe0] ss:$16 sps:$4 sm:$0xff]   ;;  %v358_v46 = vld [vmem:[%s5963_s17 + $0x8] sm:$0xff]  ;;  %s4218_s22 = sshll.u32 %s5959_s19, 5 }
  0x77   : > { %5737 = vsyncadd (%p6330_p2), [#allocation9], 4294944768  ;;  %v4866_v1 = vld [vmem:[#allocation5 + $0x2e4] ss:$16 sps:$4 sm:$0xff]   ;;  %1963 = vmatprep.subr.bf16.mxu0 %v4864_v0  ;;  %v4869_v3 = vld [vmem:[#allocation5 + $0x2e0] ss:$16 sps:$4 sm:$0xff]  }
  0x78   : > { %2016 = vmatprep.subr.bf16.mxu1 %v4866_v1  ;;  %v4870_v4 = vld [vmem:[#allocation5 + $0xc4] ss:$16 sps:$4 sm:$0xff]   ;;  %1964 = vmatpush1.bf16.msra.mxu0 %v4868_v2  ;;  %v4874_v6 = vld [vmem:[#allocation5 + $0xc0] ss:$16 sps:$4 sm:$0xff]   ;;  %v366_v47 = vld [vmem:[%s5963_s17 + $0x48] sm:$0xff]  ;;  %s353_s29 = scalar_lea.vmem [#allocation11], %s4218_s22 }
  0x79   : > { %2017 = vmatpush1.bf16.msra.mxu1 %v4869_v3  ;;  %v4872_v5 = vld [vmem:[#allocation5 + $0x2c4] ss:$16 sps:$4 sm:$0xff]   ;;  %1965 = vmatprep.subr.bf16.mxu0 %v4870_v4  ;;  %v4875_v7 = vld [vmem:[#allocation5 + $0x2c0] ss:$16 sps:$4 sm:$0xff]   ;;  %v360_v48 = vld [vmem:[%s5963_s17 + $0x18] sm:$0xff]  ;;  %v5981_v53 = vpack.c.bf16 %v366_v47, %v358_v46  ;;  %s4667_s20 = sshll.u32 %s5834_s28, 9 }
  0x7a   : > { %2018 = vmatprep.subr.bf16.mxu1 %v4872_v5  ;;  %v4876_v8 = vld [vmem:[#allocation5 + $0xa4] ss:$16 sps:$4 sm:$0xff]   ;;  %v4880_v10 = vld [vmem:[#allocation5 + $0xa0] ss:$16 sps:$4 sm:$0xff]   ;;  %v368_v49 = vld [vmem:[%s5963_s17 + $0x58] sm:$0xff]  ;;  %s4090_s13 = sshll.u32 %s353_s29, 4  ;;  %s6255_s14 = scalar_lea.hbm %s6309_s7, %s4667_s20  ;;  %s6257_s13 = int_to_ptr.vmem [resolvable:$true] %s4090_s13 }
  0x7b   : > { %v4878_v9 = vld [vmem:[#allocation5 + $0x2a4] ss:$16 sps:$4 sm:$0xff]   ;;  %v4881_v11 = vld [vmem:[#allocation5 + $0x2a0] ss:$16 sps:$4 sm:$0xff]   ;;  %v5983_v54 = vpack.c.bf16 %v368_v49, %v360_v48  ;;  %1995 = vmatprep.mubr.bf16.mxu0 %v5981_v53  ;;  %s4077_s28 = scalar_lea.sflag [#allocation4], %s5959_s19  ;;  %s5684_s1 = scalar_lea.vmem %s6257_s13, 512 }
  0x7c   : > { %1966 = vmatpush1.bf16.msra.mxu0 %v4874_v6  ;;  %v4882_v12 = vld [vmem:[#allocation5 + $0x84] ss:$16 sps:$4 sm:$0xff]   ;;  %v4886_v14 = vld [vmem:[#allocation5 + $0x80] ss:$16 sps:$4 sm:$0xff]   ;;  %p5685_p4 = scmp.ne.s32.totalorder %s6257_s13, %s5684_s1  ;;  %p6331_p8 = scmp.ne.s32.totalorder %s6322_s12, 0 }
  0x7d   : > { %2019 = vmatpush1.bf16.msra.mxu1 %v4875_v7  ;;  %1967 = vmatprep.subr.bf16.mxu0 %v4876_v8  ;;  %v4884_v13 = vld [vmem:[#allocation5 + $0x284] ss:$16 sps:$4 sm:$0xff]   ;;  %v4887_v15 = vld [vmem:[#allocation5 + $0x280] ss:$16 sps:$4 sm:$0xff]   ;;  %s5770_s16 = smov [#allocation11]  }
  0x7e   : > { %2020 = vmatprep.subr.bf16.mxu1 %v4878_v9  ;;  %v4888_v16 = vld [vmem:[#allocation5 + $0x64] ss:$16 sps:$4 sm:$0xff]   ;;  %v4892_v18 = vld [vmem:[#allocation5 + $0x60] ss:$16 sps:$4 sm:$0xff]   ;;  %2048 = vmatprep.mubr.bf16.mxu1 %v5983_v54  ;;  %p5686_p12 = pnand %p5685_p4, %p6331_p8 }
  0x7f   : > { %v4890_v17 = vld [vmem:[#allocation5 + $0x264] ss:$16 sps:$4 sm:$0xff]   ;;  %v4893_v19 = vld [vmem:[#allocation5 + $0x260] ss:$16 sps:$4 sm:$0xff]  }
  0x80   : > { %1968 = vmatpush1.bf16.msra.mxu0 %v4880_v10  ;;  %v4894_v20 = vld [vmem:[#allocation5 + $0x44] ss:$16 sps:$4 sm:$0xff]   ;;  %v4898_v22 = vld [vmem:[#allocation5 + $0x40] ss:$16 sps:$4 sm:$0xff]   ;;  %p5687_p6 = pneg %p5686_p12 }
  0x81   : > { %2021 = vmatpush1.bf16.msra.mxu1 %v4881_v11  ;;  %1969 = vmatprep.subr.bf16.mxu0 %v4882_v12  ;;  %v4896_v21 = vld [vmem:[#allocation5 + $0x244] ss:$16 sps:$4 sm:$0xff]   ;;  %v4899_v23 = vld [vmem:[#allocation5 + $0x240] ss:$16 sps:$4 sm:$0xff]  }
  0x82   : > { %2022 = vmatprep.subr.bf16.mxu1 %v4884_v13  ;;  %v4900_v24 = vld [vmem:[#allocation5 + $0x24] ss:$16 sps:$4 sm:$0xff]   ;;  %v4904_v26 = vld [vmem:[#allocation5 + $0x20] ss:$16 sps:$4 sm:$0xff]  }
  0x83   : > { %v4902_v25 = vld [vmem:[#allocation5 + $0x224] ss:$16 sps:$4 sm:$0xff]   ;;  %v4905_v27 = vld [vmem:[#allocation5 + $0x220] ss:$16 sps:$4 sm:$0xff]  }
  0x84   : > { %1970 = vmatpush1.bf16.msra.mxu0 %v4886_v14  ;;  %v4906_v28 = vld [vmem:[#allocation5 + $0x4] ss:$16 sps:$4 sm:$0xff]   ;;  %v4910_v30 = vld [vmem:[#allocation5] ss:$16 sps:$4 sm:$0xff]  }
  0x85   : > { %2023 = vmatpush1.bf16.msra.mxu1 %v4887_v15  ;;  %1971 = vmatprep.subr.bf16.mxu0 %v4888_v16  ;;  %v4908_v29 = vld [vmem:[#allocation5 + $0x204] ss:$16 sps:$4 sm:$0xff]   ;;  %v4911_v31 = vld [vmem:[#allocation5 + $0x200] ss:$16 sps:$4 sm:$0xff]  }
  0x86   : > { %2024 = vmatprep.subr.bf16.mxu1 %v4890_v17  ;;  %v4912_v32 = vld [vmem:[#allocation5 + $0x1e4] ss:$16 sps:$4 sm:$0xff]   ;;  %v4916_v34 = vld [vmem:[#allocation5 + $0x1e0] ss:$16 sps:$4 sm:$0xff]  }
  0x87   : > { %v4914_v33 = vld [vmem:[#allocation5 + $0x3e4] ss:$16 sps:$4 sm:$0xff]   ;;  %v4917_v35 = vld [vmem:[#allocation5 + $0x3e0] ss:$16 sps:$4 sm:$0xff]  }
  0x88   : > { %1972 = vmatpush1.bf16.msra.mxu0 %v4892_v18  ;;  %v4918_v36 = vld [vmem:[#allocation5 + $0x1c4] ss:$16 sps:$4 sm:$0xff]   ;;  %v4922_v38 = vld [vmem:[#allocation5 + $0x1c0] ss:$16 sps:$4 sm:$0xff]  }
  0x89   : > { %2025 = vmatpush1.bf16.msra.mxu1 %v4893_v19  ;;  %1973 = vmatprep.subr.bf16.mxu0 %v4894_v20  ;;  %v4920_v37 = vld [vmem:[#allocation5 + $0x3c4] ss:$16 sps:$4 sm:$0xff]   ;;  %v4923_v39 = vld [vmem:[#allocation5 + $0x3c0] ss:$16 sps:$4 sm:$0xff]  }
  0x8a   : > { %2026 = vmatprep.subr.bf16.mxu1 %v4896_v21  ;;  %v4924_v40 = vld [vmem:[#allocation5 + $0x1a4] ss:$16 sps:$4 sm:$0xff]   ;;  %v4928_v42 = vld [vmem:[#allocation5 + $0x1a0] ss:$16 sps:$4 sm:$0xff]  }
  0x8b   : > { %v4926_v41 = vld [vmem:[#allocation5 + $0x3a4] ss:$16 sps:$4 sm:$0xff]   ;;  %v4929_v43 = vld [vmem:[#allocation5 + $0x3a0] ss:$16 sps:$4 sm:$0xff]  }
  0x8c   : > { %1974 = vmatpush1.bf16.msra.mxu0 %v4898_v22  ;;  %v4930_v44 = vld [vmem:[#allocation5 + $0x184] ss:$16 sps:$4 sm:$0xff]   ;;  %v4934_v50 = vld [vmem:[#allocation5 + $0x180] ss:$16 sps:$4 sm:$0xff]  }
  0x8d   : > { %2027 = vmatpush1.bf16.msra.mxu1 %v4899_v23  ;;  %1975 = vmatprep.subr.bf16.mxu0 %v4900_v24  ;;  %v4932_v45 = vld [vmem:[#allocation5 + $0x384] ss:$16 sps:$4 sm:$0xff]   ;;  %v4935_v51 = vld [vmem:[#allocation5 + $0x380] ss:$16 sps:$4 sm:$0xff]  }
  0x8e   : > { %2028 = vmatprep.subr.bf16.mxu1 %v4902_v25  ;;  %v4936_v52 = vld [vmem:[#allocation5 + $0x164] ss:$16 sps:$4 sm:$0xff]   ;;  %v4940_v56 = vld [vmem:[#allocation5 + $0x160] ss:$16 sps:$4 sm:$0xff]  }
  0x8f   : > { %v4938_v55 = vld [vmem:[#allocation5 + $0x364] ss:$16 sps:$4 sm:$0xff]   ;;  %v4941_v57 = vld [vmem:[#allocation5 + $0x360] ss:$16 sps:$4 sm:$0xff]  }
  0x90   : > { %1976 = vmatpush1.bf16.msra.mxu0 %v4904_v26  ;;  %v4942_v58 = vld [vmem:[#allocation5 + $0x144] ss:$16 sps:$4 sm:$0xff]   ;;  %v4946_v60 = vld [vmem:[#allocation5 + $0x140] ss:$16 sps:$4 sm:$0xff]  }
  0x91   : > { %2029 = vmatpush1.bf16.msra.mxu1 %v4905_v27  ;;  %1977 = vmatprep.subr.bf16.mxu0 %v4906_v28  ;;  %v4944_v59 = vld [vmem:[#allocation5 + $0x344] ss:$16 sps:$4 sm:$0xff]   ;;  %v4947_v61 = vld [vmem:[#allocation5 + $0x340] ss:$16 sps:$4 sm:$0xff]  }
  0x92   : > { %2030 = vmatprep.subr.bf16.mxu1 %v4908_v29  ;;  %v4948_v62 = vld [vmem:[#allocation5 + $0x124] ss:$16 sps:$4 sm:$0xff]   ;;  %v4952_v0 = vld [vmem:[#allocation5 + $0x120] ss:$16 sps:$4 sm:$0xff]  }
  0x93   : > { %v4950_v63 = vld [vmem:[#allocation5 + $0x324] ss:$16 sps:$4 sm:$0xff]   ;;  %v4953_v1 = vld [vmem:[#allocation5 + $0x320] ss:$16 sps:$4 sm:$0xff]  }
  0x94   : > { %1978 = vmatpush1.bf16.msra.mxu0 %v4910_v30  ;;  %v4954_v2 = vld [vmem:[#allocation5 + $0x104] ss:$16 sps:$4 sm:$0xff]   ;;  %v4958_v4 = vld [vmem:[#allocation5 + $0x100] ss:$16 sps:$4 sm:$0xff]  }
  0x95   : > { %2031 = vmatpush1.bf16.msra.mxu1 %v4911_v31  ;;  %1979 = vmatprep.subr.bf16.mxu0 %v4912_v32  ;;  %v4956_v3 = vld [vmem:[#allocation5 + $0x304] ss:$16 sps:$4 sm:$0xff]   ;;  %v4959_v5 = vld [vmem:[#allocation5 + $0x300] ss:$16 sps:$4 sm:$0xff]  }
  0x96   : > { %2032 = vmatprep.subr.bf16.mxu1 %v4914_v33  ;;  %v357_v6 = vld [vmem:[%s5963_s17] sm:$0xff]  ;;  %v359_v8 = vld [vmem:[%s5963_s17 + $0x10] sm:$0xff] }
  0x97   : > { %v365_v7 = vld [vmem:[%s5963_s17 + $0x40] sm:$0xff]  ;;  %v367_v9 = vld [vmem:[%s5963_s17 + $0x50] sm:$0xff] }
  0x98   : > { %1980 = vmatpush2.bf16.msra.mxu0 %v4916_v34  ;;  %v4962_v10 = vld [vmem:[#allocation5 + $0x4e4] ss:$16 sps:$4 sm:$0xff]   ;;  %v5991_v12 = vpack.c.bf16 %v365_v7, %v357_v6  ;;  %v5993_v13 = vpack.c.bf16 %v367_v9, %v359_v8  ;;  %v4960_v14 = vld [vmem:[#allocation5 + $0x4e0] ss:$16 sps:$4 sm:$0xff]   ;;  %v374_v34 = vld [vmem:[%s5963_s17 + $0x88] sm:$0xff] }
  0x99   : > { %2033 = vmatpush2.bf16.msra.mxu1 %v4917_v35  ;;  %1981 = vmatprep.subr.bf16.mxu0 %v4918_v36  ;;  %v4965_v11 = vld [vmem:[#allocation5 + $0x6e4] ss:$16 sps:$4 sm:$0xff]   ;;  %v4963_v15 = vld [vmem:[#allocation5 + $0x6e0] ss:$16 sps:$4 sm:$0xff]   ;;  %v382_v35 = vld [vmem:[%s5963_s17 + $0xc8] sm:$0xff] }
  0x9a   : > { %2034 = vmatprep.subr.bf16.mxu1 %v4920_v37  ;;  %v4968_v16 = vld [vmem:[#allocation5 + $0x4c4] ss:$16 sps:$4 sm:$0xff]   ;;  %v4966_v18 = vld [vmem:[#allocation5 + $0x4c0] ss:$16 sps:$4 sm:$0xff]   ;;  %v6000_v37 = vpack.c.bf16 %v382_v35, %v374_v34 }
  0x9b   : > { %v4971_v17 = vld [vmem:[#allocation5 + $0x6c4] ss:$16 sps:$4 sm:$0xff]   ;;  %v4969_v19 = vld [vmem:[#allocation5 + $0x6c0] ss:$16 sps:$4 sm:$0xff]  }
  0x9c   : > { %1982 = vmatpush2.bf16.msra.mxu0 %v4922_v38  ;;  %v4974_v20 = vld [vmem:[#allocation5 + $0x4a4] ss:$16 sps:$4 sm:$0xff]   ;;  %v4972_v22 = vld [vmem:[#allocation5 + $0x4a0] ss:$16 sps:$4 sm:$0xff]  }
  0x9d   : > { %2035 = vmatpush2.bf16.msra.mxu1 %v4923_v39  ;;  %1983 = vmatprep.subr.bf16.mxu0 %v4924_v40  ;;  %v4977_v21 = vld [vmem:[#allocation5 + $0x6a4] ss:$16 sps:$4 sm:$0xff]   ;;  %v4975_v23 = vld [vmem:[#allocation5 + $0x6a0] ss:$16 sps:$4 sm:$0xff]   ;;  %v376_v39 = vld [vmem:[%s5963_s17 + $0x98] sm:$0xff] }
  0x9e   : > { %2036 = vmatprep.subr.bf16.mxu1 %v4926_v41  ;;  %v4980_v24 = vld [vmem:[#allocation5 + $0x484] ss:$16 sps:$4 sm:$0xff]   ;;  %v4978_v26 = vld [vmem:[#allocation5 + $0x480] ss:$16 sps:$4 sm:$0xff]   ;;  %v384_v40 = vld [vmem:[%s5963_s17 + $0xd8] sm:$0xff] }
  0x9f   : > { %v4983_v25 = vld [vmem:[#allocation5 + $0x684] ss:$16 sps:$4 sm:$0xff]   ;;  %v4981_v27 = vld [vmem:[#allocation5 + $0x680] ss:$16 sps:$4 sm:$0xff]  }
  0xa0   : > { %1984 = vmatpush2.bf16.msra.mxu0 %v4928_v42  ;;  %v4986_v28 = vld [vmem:[#allocation5 + $0x464] ss:$16 sps:$4 sm:$0xff]   ;;  %v4984_v30 = vld [vmem:[#allocation5 + $0x460] ss:$16 sps:$4 sm:$0xff]  }
  0xa1   : > { %2037 = vmatpush2.bf16.msra.mxu1 %v4929_v43  ;;  %1985 = vmatprep.subr.bf16.mxu0 %v4930_v44  ;;  %v4989_v29 = vld [vmem:[#allocation5 + $0x664] ss:$16 sps:$4 sm:$0xff]   ;;  %v4987_v31 = vld [vmem:[#allocation5 + $0x660] ss:$16 sps:$4 sm:$0xff]   ;;  %v6007_v43 = vpack.c.bf16 %v384_v40, %v376_v39  ;;  %v5058_v39 = vld [vmem:[#allocation5 + $0xec] ss:$16 sps:$4 sm:$0xff]  }
  0xa2   : > { %2038 = vmatprep.subr.bf16.mxu1 %v4932_v45  ;;  %v4992_v32 = vld [vmem:[#allocation5 + $0x444] ss:$16 sps:$4 sm:$0xff]   ;;  %v4990_v41 = vld [vmem:[#allocation5 + $0x440] ss:$16 sps:$4 sm:$0xff]   ;;  %v5061_v40 = vld [vmem:[#allocation5 + $0x2ec] ss:$16 sps:$4 sm:$0xff]  }
  0xa3   : > { %v4995_v33 = vld [vmem:[#allocation5 + $0x644] ss:$16 sps:$4 sm:$0xff]   ;;  %v4993_v44 = vld [vmem:[#allocation5 + $0x640] ss:$16 sps:$4 sm:$0xff]  }
  0xa4   : > { %1986 = vmatpush2.bf16.msra.mxu0 %v4934_v50  ;;  %v373_v36 = vld [vmem:[%s5963_s17 + $0x80] sm:$0xff]  ;;  %v375_v47 = vld [vmem:[%s5963_s17 + $0x90] sm:$0xff] }
  0xa5   : > { %2039 = vmatpush2.bf16.msra.mxu1 %v4935_v51  ;;  %1987 = vmatprep.subr.bf16.mxu0 %v4936_v52  ;;  %v381_v38 = vld [vmem:[%s5963_s17 + $0xc0] sm:$0xff]  ;;  %v383_v48 = vld [vmem:[%s5963_s17 + $0xd0] sm:$0xff] }
  0xa6   : > { %2040 = vmatprep.subr.bf16.mxu1 %v4938_v55  ;;  %v6005_v42 = vpack.c.bf16 %v381_v38, %v373_v36  ;;  %v4998_v45 = vld [vmem:[#allocation5 + $0x424] ss:$16 sps:$4 sm:$0xff]   ;;  %v6014_v49 = vpack.c.bf16 %v383_v48, %v375_v47  ;;  %v4996_v50 = vld [vmem:[#allocation5 + $0x420] ss:$16 sps:$4 sm:$0xff]  }
  0xa7   : > { %v5001_v46 = vld [vmem:[#allocation5 + $0x624] ss:$16 sps:$4 sm:$0xff]   ;;  %v4999_v51 = vld [vmem:[#allocation5 + $0x620] ss:$16 sps:$4 sm:$0xff]  }
  0xa8   : > { %1988 = vmatpush2.bf16.msra.mxu0 %v4940_v56  ;;  %v5004_v52 = vld [vmem:[#allocation5 + $0x404] ss:$16 sps:$4 sm:$0xff]   ;;  %v362_v56 = vld [vmem:[%s5963_s17 + $0x28] sm:$0xff]  ;;  %v5014_v6 = vld [vmem:[#allocation5 + $0x5c0] ss:$16 sps:$4 sm:$0xff]  }
  0xa9   : > { %2041 = vmatpush2.bf16.msra.mxu1 %v4941_v57  ;;  %1989 = vmatprep.subr.bf16.mxu0 %v4942_v58  ;;  %v5007_v55 = vld [vmem:[#allocation5 + $0x604] ss:$16 sps:$4 sm:$0xff]   ;;  %v370_v57 = vld [vmem:[%s5963_s17 + $0x68] sm:$0xff]  ;;  %v364_v58 = vld [vmem:[%s5963_s17 + $0x38] sm:$0xff] }
  0xaa   : > { %2042 = vmatprep.subr.bf16.mxu1 %v4944_v59  ;;  %v372_v59 = vld [vmem:[%s5963_s17 + $0x78] sm:$0xff]  ;;  %v5017_v7 = vld [vmem:[#allocation5 + $0x7c0] ss:$16 sps:$4 sm:$0xff]   ;;  %v5022_v8 = vld [vmem:[#allocation5 + $0x5a4] ss:$16 sps:$4 sm:$0xff]  }
  0xab   : > { %v5025_v9 = vld [vmem:[#allocation5 + $0x7a4] ss:$16 sps:$4 sm:$0xff]  }
  0xac   : > { %1990 = vmatpush2.bf16.msra.mxu0 %v4946_v60  ;;  %v5002_v60 = vld [vmem:[#allocation5 + $0x400] ss:$16 sps:$4 sm:$0xff]  }
  0xad   : > { %2043 = vmatpush2.bf16.msra.mxu1 %v4947_v61  ;;  %1991 = vmatprep.subr.bf16.mxu0 %v4948_v62  ;;  %v5005_v61 = vld [vmem:[#allocation5 + $0x600] ss:$16 sps:$4 sm:$0xff]   ;;  %v5010_v62 = vld [vmem:[#allocation5 + $0x5e4] ss:$16 sps:$4 sm:$0xff]  }
  0xae   : > { %2044 = vmatprep.subr.bf16.mxu1 %v4950_v63  ;;  %v6021_v63 = vpack.c.bf16 %v370_v57, %v362_v56  ;;  %v361_v34 = vld [vmem:[%s5963_s17 + $0x20] sm:$0xff]  ;;  %v363_v36 = vld [vmem:[%s5963_s17 + $0x30] sm:$0xff]  ;;  %v5062_v56 = vld [vmem:[#allocation5 + $0xc8] ss:$16 sps:$4 sm:$0xff]  }
  0xaf   : > { %v369_v35 = vld [vmem:[%s5963_s17 + $0x60] sm:$0xff]  ;;  %v371_v38 = vld [vmem:[%s5963_s17 + $0x70] sm:$0xff]  ;;  %v5065_v57 = vld [vmem:[#allocation5 + $0x2c8] ss:$16 sps:$4 sm:$0xff]  }
  0xb0   : > { %1992 = vmatpush2.bf16.msra.mxu0 %v4952_v0  ;;  %v6023_v0 = vpack.c.bf16 %v372_v59, %v364_v58  ;;  %v6033_v47 = vpack.c.bf16 %v369_v35, %v361_v34  ;;  %v6035_v48 = vpack.c.bf16 %v371_v38, %v363_v36  ;;  %v377_v59 = vld [vmem:[%s5963_s17 + $0xa0] sm:$0xff]  ;;  %v5110_v34 = vld [vmem:[#allocation5 + $0x1c8] ss:$16 sps:$4 sm:$0xff]   ;;  %v5118_v36 = vld [vmem:[#allocation5 + $0x1ac] ss:$16 sps:$4 sm:$0xff]  }
  0xb1   : > { %2045 = vmatpush2.bf16.msra.mxu1 %v4953_v1  ;;  %1993 = vmatprep.subr.bf16.mxu0 %v4954_v2  ;;  %v5013_v1 = vld [vmem:[#allocation5 + $0x7e4] ss:$16 sps:$4 sm:$0xff]   ;;  %v5008_v2 = vld [vmem:[#allocation5 + $0x5e0] ss:$16 sps:$4 sm:$0xff]   ;;  %v5113_v35 = vld [vmem:[#allocation5 + $0x3c8] ss:$16 sps:$4 sm:$0xff]  }
  0xb2   : > { %2046 = vmatprep.subr.bf16.mxu1 %v4956_v3  ;;  %v5011_v3 = vld [vmem:[#allocation5 + $0x7e0] ss:$16 sps:$4 sm:$0xff]   ;;  %v5121_v38 = vld [vmem:[#allocation5 + $0x3ac] ss:$16 sps:$4 sm:$0xff]  }
  0xb4   : > { %1994 = vmatpush2.bf16.msra.mxu0 %v4958_v4  ;;  %v5016_v4 = vld [vmem:[#allocation5 + $0x5c4] ss:$16 sps:$4 sm:$0xff]  }
  0xb5   : > { %2047 = vmatpush2.bf16.msra.mxu1 %v4959_v5  ;;  %2069 = vmatprep.subr.bf16.mxu0 %v4962_v10  ;;  %v5019_v5 = vld [vmem:[#allocation5 + $0x7c4] ss:$16 sps:$4 sm:$0xff]   ;;  %v5020_v10 = vld [vmem:[#allocation5 + $0x5a0] ss:$16 sps:$4 sm:$0xff]  }
  0xb6   : > { %2122 = vmatprep.subr.bf16.mxu1 %v4965_v11  ;;  %v5023_v11 = vld [vmem:[#allocation5 + $0x7a0] ss:$16 sps:$4 sm:$0xff]  }
  0xb7   : > { %1996 = vmatmul.mubr.bf16.vlgmr.msra.gmra.mxu0 %v5991_v12 }
  0xb8   : > { %2049 = vmatmul.mubr.bf16.vlgmr.msra.gmra.mxu1 %v5993_v13  ;;  %2070 = vmatpush1.bf16.msra.mxu0 %v4960_v14  ;;  %v5028_v14 = vld [vmem:[#allocation5 + $0x584] ss:$16 sps:$4 sm:$0xff]  }
  0xb9   : > { %2123 = vmatpush1.bf16.msra.mxu1 %v4963_v15  ;;  %2071 = vmatprep.subr.bf16.mxu0 %v4968_v16  ;;  %v5031_v15 = vld [vmem:[#allocation5 + $0x784] ss:$16 sps:$4 sm:$0xff]   ;;  %v5026_v16 = vld [vmem:[#allocation5 + $0x580] ss:$16 sps:$4 sm:$0xff]  }
  0xba   : > { %2124 = vmatprep.subr.bf16.mxu1 %v4971_v17  ;;  %2005 = vmatprep.mubr.bf16.mxu0 %v6000_v37  ;;  %v5029_v17 = vld [vmem:[#allocation5 + $0x780] ss:$16 sps:$4 sm:$0xff]  }
  0xbb   : > { %2058 = vmatprep.mubr.bf16.mxu1 %v6007_v43 }
  0xbc   : > { %2072 = vmatpush1.bf16.msra.mxu0 %v4966_v18  ;;  %v5034_v18 = vld [vmem:[#allocation5 + $0x564] ss:$16 sps:$4 sm:$0xff]  }
  0xbd   : > { %2125 = vmatpush1.bf16.msra.mxu1 %v4969_v19  ;;  %2073 = vmatprep.subr.bf16.mxu0 %v4974_v20  ;;  %v5037_v19 = vld [vmem:[#allocation5 + $0x764] ss:$16 sps:$4 sm:$0xff]   ;;  %v5032_v20 = vld [vmem:[#allocation5 + $0x560] ss:$16 sps:$4 sm:$0xff]  }
  0xbe   : > { %2126 = vmatprep.subr.bf16.mxu1 %v4977_v21  ;;  %v5035_v21 = vld [vmem:[#allocation5 + $0x760] ss:$16 sps:$4 sm:$0xff]  }
  0xbf   : > { %2006 = vmatmul.mubr.bf16.gmra.mxu0 %v6005_v42 }
  0xc0   : > { %2074 = vmatpush1.bf16.msra.mxu0 %v4972_v22  ;;  %2059 = vmatmul.mubr.bf16.gmra.mxu1 %v6014_v49  ;;  %v5040_v22 = vld [vmem:[#allocation5 + $0x544] ss:$16 sps:$4 sm:$0xff]  }
  0xc1   : > { %2127 = vmatpush1.bf16.msra.mxu1 %v4975_v23  ;;  %2075 = vmatprep.subr.bf16.mxu0 %v4980_v24  ;;  %v5043_v23 = vld [vmem:[#allocation5 + $0x744] ss:$16 sps:$4 sm:$0xff]   ;;  %v5038_v24 = vld [vmem:[#allocation5 + $0x540] ss:$16 sps:$4 sm:$0xff]  }
  0xc2   : > { %2128 = vmatprep.subr.bf16.mxu1 %v4983_v25  ;;  %2101 = vmatprep.mubr.bf16.mxu0 %v6021_v63  ;;  %v5041_v25 = vld [vmem:[#allocation5 + $0x740] ss:$16 sps:$4 sm:$0xff]  }
  0xc3   : > { %2154 = vmatprep.mubr.bf16.mxu1 %v6023_v0 }
  0xc4   : > { %2076 = vmatpush1.bf16.msra.mxu0 %v4978_v26  ;;  %v5046_v26 = vld [vmem:[#allocation5 + $0x524] ss:$16 sps:$4 sm:$0xff]  }
  0xc5   : > { %2129 = vmatpush1.bf16.msra.mxu1 %v4981_v27  ;;  %2077 = vmatprep.subr.bf16.mxu0 %v4986_v28  ;;  %v5049_v27 = vld [vmem:[#allocation5 + $0x724] ss:$16 sps:$4 sm:$0xff]   ;;  %v5044_v28 = vld [vmem:[#allocation5 + $0x520] ss:$16 sps:$4 sm:$0xff]  }
  0xc6   : > { %2130 = vmatprep.subr.bf16.mxu1 %v4989_v29  ;;  %v5047_v29 = vld [vmem:[#allocation5 + $0x720] ss:$16 sps:$4 sm:$0xff]  }
  0xc8   : > { %2078 = vmatpush1.bf16.msra.mxu0 %v4984_v30  ;;  %v5052_v30 = vld [vmem:[#allocation5 + $0x504] ss:$16 sps:$4 sm:$0xff]  }
  0xc9   : > { %2131 = vmatpush1.bf16.msra.mxu1 %v4987_v31  ;;  %2079 = vmatprep.subr.bf16.mxu0 %v4992_v32  ;;  %v5055_v31 = vld [vmem:[#allocation5 + $0x704] ss:$16 sps:$4 sm:$0xff]   ;;  %v5050_v32 = vld [vmem:[#allocation5 + $0x500] ss:$16 sps:$4 sm:$0xff]  }
  0xca   : > { %2132 = vmatprep.subr.bf16.mxu1 %v4995_v33  ;;  %v5053_v33 = vld [vmem:[#allocation5 + $0x700] ss:$16 sps:$4 sm:$0xff]  }
  0xcc   : > { %2080 = vmatpush1.bf16.msra.mxu0 %v4990_v41  ;;  %v5056_v41 = vld [vmem:[#allocation5 + $0xe8] ss:$16 sps:$4 sm:$0xff]  }
  0xcd   : > { %2133 = vmatpush1.bf16.msra.mxu1 %v4993_v44  ;;  %2081 = vmatprep.subr.bf16.mxu0 %v4998_v45  ;;  %v5059_v44 = vld [vmem:[#allocation5 + $0x2e8] ss:$16 sps:$4 sm:$0xff]  }
  0xce   : > { %2134 = vmatprep.subr.bf16.mxu1 %v5001_v46  ;;  %v378_v45 = vld [vmem:[%s5963_s17 + $0xa8] sm:$0xff] }
  0xcf   : > { %v386_v46 = vld [vmem:[%s5963_s17 + $0xe8] sm:$0xff] }
  0xd0   : > { %2082 = vmatpush1.bf16.msra.mxu0 %v4996_v50  ;;  %v380_v50 = vld [vmem:[%s5963_s17 + $0xb8] sm:$0xff]  ;;  %v6039_v58 = vpack.c.bf16 %v386_v46, %v378_v45 }
  0xd1   : > { %2135 = vmatpush1.bf16.msra.mxu1 %v4999_v51  ;;  %2083 = vmatprep.subr.bf16.mxu0 %v5004_v52  ;;  %v388_v51 = vld [vmem:[%s5963_s17 + $0xf8] sm:$0xff] }
  0xd2   : > { %2136 = vmatprep.subr.bf16.mxu1 %v5007_v55  ;;  %v5064_v52 = vld [vmem:[#allocation5 + $0xcc] ss:$16 sps:$4 sm:$0xff]   ;;  %v5122_v45 = vld [vmem:[#allocation5 + $0x188] ss:$16 sps:$4 sm:$0xff]  }
  0xd3   : > { %v5067_v55 = vld [vmem:[#allocation5 + $0x2cc] ss:$16 sps:$4 sm:$0xff]   ;;  %v5125_v46 = vld [vmem:[#allocation5 + $0x388] ss:$16 sps:$4 sm:$0xff]  }
  0xd4   : > { %2084 = vmatpush1.bf16.msra.mxu0 %v5002_v60  ;;  %v385_v60 = vld [vmem:[%s5963_s17 + $0xe0] sm:$0xff] }
  0xd5   : > { %2137 = vmatpush1.bf16.msra.mxu1 %v5005_v61  ;;  %2085 = vmatprep.subr.bf16.mxu0 %v5010_v62  ;;  %v6043_v61 = vpack.c.bf16 %v388_v51, %v380_v50  ;;  %v5070_v62 = vld [vmem:[#allocation5 + $0xac] ss:$16 sps:$4 sm:$0xff]  }
  0xd6   : > { %2138 = vmatprep.subr.bf16.mxu1 %v5013_v1  ;;  %v379_v1 = vld [vmem:[%s5963_s17 + $0xb0] sm:$0xff]  ;;  %v5130_v50 = vld [vmem:[#allocation5 + $0x16c] ss:$16 sps:$4 sm:$0xff]  }
  0xd7   : > { %v5133_v51 = vld [vmem:[#allocation5 + $0x36c] ss:$16 sps:$4 sm:$0xff]  }
  0xd8   : > { %2086 = vmatpush2.bf16.msra.mxu0 %v5008_v2  ;;  %v387_v2 = vld [vmem:[%s5963_s17 + $0xf0] sm:$0xff]  ;;  %s5688_s17 = sshll.u32 %s5770_s16, 4  ;;  %s5689_s17 = int_to_ptr.vmem [resolvable:$false] %s5688_s17 }
  0xd9   : > { %2139 = vmatpush2.bf16.msra.mxu1 %v5011_v3  ;;  %2087 = vmatprep.subr.bf16.mxu0 %v5016_v4  ;;  %v5073_v3 = vld [vmem:[#allocation5 + $0x2ac] ss:$16 sps:$4 sm:$0xff]   ;;  %v6051_v4 = vpack.c.bf16 %v385_v60, %v377_v59  ;;  %v5134_v59 = vld [vmem:[#allocation5 + $0x148] ss:$16 sps:$4 sm:$0xff]   ;;  %s5690_s30 = scalar_lea.vmem %s5689_s17, 1024  ;;  %p5691_p3 = scmp.lt.s32.totalorder %s6257_s13, %s5689_s17 }
  0xda   : > { %2140 = vmatprep.subr.bf16.mxu1 %v5019_v5  ;;  %v5068_v5 = vld [vmem:[#allocation5 + $0xa8] ss:$16 sps:$4 sm:$0xff]   ;;  %p5692_p9 = scmp.lt.s32.totalorder %s5690_s30, %s5684_s1 }
  0xdb   : > { %v5137_v60 = vld [vmem:[#allocation5 + $0x348] ss:$16 sps:$4 sm:$0xff]  }
  0xdc   : > { %2088 = vmatpush2.bf16.msra.mxu0 %v5014_v6  ;;  %v5071_v6 = vld [vmem:[#allocation5 + $0x2a8] ss:$16 sps:$4 sm:$0xff]   ;;  %p5693_p13 = por %p5692_p9, %p5691_p3 }
  0xdd   : > { %2141 = vmatpush2.bf16.msra.mxu1 %v5017_v7  ;;  %2089 = vmatprep.subr.bf16.mxu0 %v5022_v8  ;;  %v6053_v7 = vpack.c.bf16 %v387_v2, %v379_v1  ;;  %v5076_v8 = vld [vmem:[#allocation5 + $0x8c] ss:$16 sps:$4 sm:$0xff]   ;;  %v5140_v2 = vld [vmem:[#allocation5 + $0x128] ss:$16 sps:$4 sm:$0xff]  }
  0xde   : > { %2142 = vmatprep.subr.bf16.mxu1 %v5025_v9  ;;  %v5079_v9 = vld [vmem:[#allocation5 + $0x28c] ss:$16 sps:$4 sm:$0xff]   ;;  %p5694_p5 = pnand %p5693_p13, %p5687_p6 }
  0xdf   : > { %v5145_v1 = vld [vmem:[#allocation5 + $0x32c] ss:$16 sps:$4 sm:$0xff]  }
  0xe0   : > { %2090 = vmatpush2.bf16.msra.mxu0 %v5020_v10  ;;  %v5074_v10 = vld [vmem:[#allocation5 + $0x88] ss:$16 sps:$4 sm:$0xff]  }
  0xe1   : > { %2143 = vmatpush2.bf16.msra.mxu1 %v5023_v11  ;;  %2091 = vmatprep.subr.bf16.mxu0 %v5028_v14  ;;  %v5077_v11 = vld [vmem:[#allocation5 + $0x288] ss:$16 sps:$4 sm:$0xff]   ;;  %v5082_v14 = vld [vmem:[#allocation5 + $0x6c] ss:$16 sps:$4 sm:$0xff]  }
  0xe2   : > { %2144 = vmatprep.subr.bf16.mxu1 %v5031_v15  ;;  %v5085_v15 = vld [vmem:[#allocation5 + $0x26c] ss:$16 sps:$4 sm:$0xff]  }
  0xe4   : > { %2092 = vmatpush2.bf16.msra.mxu0 %v5026_v16  ;;  %v5080_v16 = vld [vmem:[#allocation5 + $0x68] ss:$16 sps:$4 sm:$0xff]  }
  0xe5   : > { %2145 = vmatpush2.bf16.msra.mxu1 %v5029_v17  ;;  %2093 = vmatprep.subr.bf16.mxu0 %v5034_v18  ;;  %v5083_v17 = vld [vmem:[#allocation5 + $0x268] ss:$16 sps:$4 sm:$0xff]   ;;  %v5088_v18 = vld [vmem:[#allocation5 + $0x4c] ss:$16 sps:$4 sm:$0xff]  }
  0xe6   : > { %2146 = vmatprep.subr.bf16.mxu1 %v5037_v19  ;;  %v5091_v19 = vld [vmem:[#allocation5 + $0x24c] ss:$16 sps:$4 sm:$0xff]  }
  0xe8   : > { %2094 = vmatpush2.bf16.msra.mxu0 %v5032_v20  ;;  %v5086_v20 = vld [vmem:[#allocation5 + $0x48] ss:$16 sps:$4 sm:$0xff]  }
  0xe9   : > { %2147 = vmatpush2.bf16.msra.mxu1 %v5035_v21  ;;  %2095 = vmatprep.subr.bf16.mxu0 %v5040_v22  ;;  %v5089_v21 = vld [vmem:[#allocation5 + $0x248] ss:$16 sps:$4 sm:$0xff]   ;;  %v5094_v22 = vld [vmem:[#allocation5 + $0x2c] ss:$16 sps:$4 sm:$0xff]  }
  0xea   : > { %2148 = vmatprep.subr.bf16.mxu1 %v5043_v23  ;;  %v5097_v23 = vld [vmem:[#allocation5 + $0x22c] ss:$16 sps:$4 sm:$0xff]  }
  0xec   : > { %2096 = vmatpush2.bf16.msra.mxu0 %v5038_v24  ;;  %v5092_v24 = vld [vmem:[#allocation5 + $0x28] ss:$16 sps:$4 sm:$0xff]  }
  0xed   : > { %2149 = vmatpush2.bf16.msra.mxu1 %v5041_v25  ;;  %2097 = vmatprep.subr.bf16.mxu0 %v5046_v26  ;;  %v5103_v25 = vld [vmem:[#allocation5 + $0x20c] ss:$16 sps:$4 sm:$0xff]   ;;  %v5098_v26 = vld [vmem:[#allocation5 + $0x8] ss:$16 sps:$4 sm:$0xff]  }
  0xee   : > { %2150 = vmatprep.subr.bf16.mxu1 %v5049_v27  ;;  %v5101_v27 = vld [vmem:[#allocation5 + $0x208] ss:$16 sps:$4 sm:$0xff]  }
  0xf0   : > { %2098 = vmatpush2.bf16.msra.mxu0 %v5044_v28  ;;  %v5106_v28 = vld [vmem:[#allocation5 + $0x1ec] ss:$16 sps:$4 sm:$0xff]  }
  0xf1   : > { %2151 = vmatpush2.bf16.msra.mxu1 %v5047_v29  ;;  %2099 = vmatprep.subr.bf16.mxu0 %v5052_v30  ;;  %v5109_v29 = vld [vmem:[#allocation5 + $0x3ec] ss:$16 sps:$4 sm:$0xff]   ;;  %v5104_v30 = vld [vmem:[#allocation5 + $0x1e8] ss:$16 sps:$4 sm:$0xff]  }
  0xf2   : > { %2152 = vmatprep.subr.bf16.mxu1 %v5055_v31  ;;  %v5107_v31 = vld [vmem:[#allocation5 + $0x3e8] ss:$16 sps:$4 sm:$0xff]  }
  0xf4   : > { %2100 = vmatpush2.bf16.msra.mxu0 %v5050_v32  ;;  %v5112_v32 = vld [vmem:[#allocation5 + $0x1cc] ss:$16 sps:$4 sm:$0xff]  }
  0xf5   : > { %2153 = vmatpush2.bf16.msra.mxu1 %v5053_v33  ;;  %2175 = vmatprep.subr.bf16.mxu0 %v5058_v39  ;;  %v5115_v33 = vld [vmem:[#allocation5 + $0x3cc] ss:$16 sps:$4 sm:$0xff]   ;;  %v5116_v39 = vld [vmem:[#allocation5 + $0x1a8] ss:$16 sps:$4 sm:$0xff]  }
  0xf6   : > { %2228 = vmatprep.subr.bf16.mxu1 %v5061_v40  ;;  %v5119_v40 = vld [vmem:[#allocation5 + $0x3a8] ss:$16 sps:$4 sm:$0xff]  }
  0xf7   : > { %2102 = vmatmul.mubr.bf16.vlgmr.msra.gmra.mxu0 %v6033_v47 }
  0xf8   : > { %2155 = vmatmul.mubr.bf16.vlgmr.msra.gmra.mxu1 %v6035_v48  ;;  %2176 = vmatpush1.bf16.msra.mxu0 %v5056_v41  ;;  %v5124_v41 = vld [vmem:[#allocation5 + $0x18c] ss:$16 sps:$4 sm:$0xff]  }
  0xf9   : > { %2229 = vmatpush1.bf16.msra.mxu1 %v5059_v44  ;;  %2177 = vmatprep.subr.bf16.mxu0 %v5064_v52  ;;  %v5127_v44 = vld [vmem:[#allocation5 + $0x38c] ss:$16 sps:$4 sm:$0xff]   ;;  %v5128_v52 = vld [vmem:[#allocation5 + $0x168] ss:$16 sps:$4 sm:$0xff]  }
  0xfa   : > { %2230 = vmatprep.subr.bf16.mxu1 %v5067_v55  ;;  %2111 = vmatprep.mubr.bf16.mxu0 %v6039_v58  ;;  %v5131_v55 = vld [vmem:[#allocation5 + $0x368] ss:$16 sps:$4 sm:$0xff]  }
  0xfb   : > { %2164 = vmatprep.mubr.bf16.mxu1 %v6043_v61 }
  0xfc   : > { %2178 = vmatpush1.bf16.msra.mxu0 %v5062_v56  ;;  %v5136_v56 = vld [vmem:[#allocation5 + $0x14c] ss:$16 sps:$4 sm:$0xff]  }
  0xfd   : > { %2231 = vmatpush1.bf16.msra.mxu1 %v5065_v57  ;;  %2179 = vmatprep.subr.bf16.mxu0 %v5070_v62  ;;  %v5139_v57 = vld [vmem:[#allocation5 + $0x34c] ss:$16 sps:$4 sm:$0xff]  }
  0xfe   : > { %2232 = vmatprep.subr.bf16.mxu1 %v5073_v3  ;;  %v5142_v62 = vld [vmem:[#allocation5 + $0x12c] ss:$16 sps:$4 sm:$0xff]   ;;  %v5143_v3 = vld [vmem:[#allocation5 + $0x328] ss:$16 sps:$4 sm:$0xff]  }
  0xff   : > { %2112 = vmatmul.mubr.bf16.gmra.mxu0 %v6051_v4 }
 0x100   : > { %2165 = vmatmul.mubr.bf16.gmra.mxu1 %v6053_v7  ;;  %2180 = vmatpush1.bf16.msra.mxu0 %v5068_v5  ;;  %v5148_v5 = vld [vmem:[#allocation5 + $0x10c] ss:$16 sps:$4 sm:$0xff]  }
 0x101   : > { %2233 = vmatpush1.bf16.msra.mxu1 %v5071_v6  ;;  %2181 = vmatprep.subr.bf16.mxu0 %v5076_v8  ;;  %v5151_v6 = vld [vmem:[#allocation5 + $0x30c] ss:$16 sps:$4 sm:$0xff]   ;;  %v5146_v8 = vld [vmem:[#allocation5 + $0x108] ss:$16 sps:$4 sm:$0xff]  }
 0x102   : > { %2234 = vmatprep.subr.bf16.mxu1 %v5079_v9  ;;  %2207 = vmatprep.mubr.bf16.mxu0 %v5981_v53  ;;  %v5095_v53 = vld [vmem:[#allocation5 + $0x228] ss:$16 sps:$4 sm:$0xff]  }
 0x103   : > { %2260 = vmatprep.mubr.bf16.mxu1 %v5983_v54  ;;  %v5100_v54 = vld [vmem:[#allocation5 + $0xc] ss:$16 sps:$4 sm:$0xff]   ;;  %v5149_v9 = vld [vmem:[#allocation5 + $0x308] ss:$16 sps:$4 sm:$0xff]  }
 0x104   : > { %2182 = vmatpush1.bf16.msra.mxu0 %v5074_v10  ;;  %v5154_v10 = vld [vmem:[#allocation5 + $0x4ec] ss:$16 sps:$4 sm:$0xff]  }
 0x105   : > { %2235 = vmatpush1.bf16.msra.mxu1 %v5077_v11  ;;  %2183 = vmatprep.subr.bf16.mxu0 %v5082_v14  ;;  %v5157_v11 = vld [vmem:[#allocation5 + $0x6ec] ss:$16 sps:$4 sm:$0xff]   ;;  %v5152_v14 = vld [vmem:[#allocation5 + $0x4e8] ss:$16 sps:$4 sm:$0xff]  }
 0x106   : > { %2236 = vmatprep.subr.bf16.mxu1 %v5085_v15  ;;  %v5155_v15 = vld [vmem:[#allocation5 + $0x6e8] ss:$16 sps:$4 sm:$0xff]  }
 0x108   : > { %2184 = vmatpush1.bf16.msra.mxu0 %v5080_v16  ;;  %v5160_v16 = vld [vmem:[#allocation5 + $0x4cc] ss:$16 sps:$4 sm:$0xff]  }
 0x109   : > { %2237 = vmatpush1.bf16.msra.mxu1 %v5083_v17  ;;  %2185 = vmatprep.subr.bf16.mxu0 %v5088_v18  ;;  %v5163_v17 = vld [vmem:[#allocation5 + $0x6cc] ss:$16 sps:$4 sm:$0xff]   ;;  %v5158_v18 = vld [vmem:[#allocation5 + $0x4c8] ss:$16 sps:$4 sm:$0xff]  }
 0x10a   : > { %2238 = vmatprep.subr.bf16.mxu1 %v5091_v19  ;;  %v5161_v19 = vld [vmem:[#allocation5 + $0x6c8] ss:$16 sps:$4 sm:$0xff]  }
 0x10c   : > { %2186 = vmatpush1.bf16.msra.mxu0 %v5086_v20  ;;  %v5166_v20 = vld [vmem:[#allocation5 + $0x4ac] ss:$16 sps:$4 sm:$0xff]  }
 0x10d   : > { %2239 = vmatpush1.bf16.msra.mxu1 %v5089_v21  ;;  %2187 = vmatprep.subr.bf16.mxu0 %v5094_v22  ;;  %v5169_v21 = vld [vmem:[#allocation5 + $0x6ac] ss:$16 sps:$4 sm:$0xff]   ;;  %v5164_v22 = vld [vmem:[#allocation5 + $0x4a8] ss:$16 sps:$4 sm:$0xff]  }
 0x10e   : > { %2240 = vmatprep.subr.bf16.mxu1 %v5097_v23  ;;  %v5167_v23 = vld [vmem:[#allocation5 + $0x6a8] ss:$16 sps:$4 sm:$0xff]  }
 0x110   : > { %2188 = vmatpush1.bf16.msra.mxu0 %v5092_v24  ;;  %v5170_v24 = vld [vmem:[#allocation5 + $0x488] ss:$16 sps:$4 sm:$0xff]  }
 0x111   : > { %2241 = vmatpush1.bf16.msra.mxu1 %v5095_v53  ;;  %2189 = vmatprep.subr.bf16.mxu0 %v5100_v54  ;;  %v5173_v53 = vld [vmem:[#allocation5 + $0x688] ss:$16 sps:$4 sm:$0xff]   ;;  %v5178_v54 = vld [vmem:[#allocation5 + $0x46c] ss:$16 sps:$4 sm:$0xff]  }
 0x112   : > { %2242 = vmatprep.subr.bf16.mxu1 %v5103_v25  ;;  %v5179_v25 = vld [vmem:[#allocation5 + $0x668] ss:$16 sps:$4 sm:$0xff]  }
 0x114   : > { %2190 = vmatpush1.bf16.msra.mxu0 %v5098_v26  ;;  %v5184_v26 = vld [vmem:[#allocation5 + $0x44c] ss:$16 sps:$4 sm:$0xff]  }
 0x115   : > { %2243 = vmatpush1.bf16.msra.mxu1 %v5101_v27  ;;  %2191 = vmatprep.subr.bf16.mxu0 %v5106_v28  ;;  %v5182_v27 = vld [vmem:[#allocation5 + $0x448] ss:$16 sps:$4 sm:$0xff]   ;;  %v5190_v28 = vld [vmem:[#allocation5 + $0x42c] ss:$16 sps:$4 sm:$0xff]  }
 0x116   : > { %2244 = vmatprep.subr.bf16.mxu1 %v5109_v29  ;;  %v5193_v29 = vld [vmem:[#allocation5 + $0x62c] ss:$16 sps:$4 sm:$0xff]  }
 0x118   : > { %2192 = vmatpush2.bf16.msra.mxu0 %v5104_v30  ;;  %v5188_v30 = vld [vmem:[#allocation5 + $0x428] ss:$16 sps:$4 sm:$0xff]  }
 0x119   : > { %2245 = vmatpush2.bf16.msra.mxu1 %v5107_v31  ;;  %2193 = vmatprep.subr.bf16.mxu0 %v5112_v32  ;;  %v5191_v31 = vld [vmem:[#allocation5 + $0x628] ss:$16 sps:$4 sm:$0xff]   ;;  %v5196_v32 = vld [vmem:[#allocation5 + $0x40c] ss:$16 sps:$4 sm:$0xff]  }
 0x11a   : > { %2246 = vmatprep.subr.bf16.mxu1 %v5115_v33  ;;  %v5197_v33 = vld [vmem:[#allocation5 + $0x608] ss:$16 sps:$4 sm:$0xff]  }
 0x11c   : > { %2194 = vmatpush2.bf16.msra.mxu0 %v5110_v34  ;;  %v5202_v34 = vld [vmem:[#allocation5 + $0x5ec] ss:$16 sps:$4 sm:$0xff]  }
 0x11d   : > { %2247 = vmatpush2.bf16.msra.mxu1 %v5113_v35  ;;  %2195 = vmatprep.subr.bf16.mxu0 %v5118_v36  ;;  %v5205_v35 = vld [vmem:[#allocation5 + $0x7ec] ss:$16 sps:$4 sm:$0xff]   ;;  %v5200_v36 = vld [vmem:[#allocation5 + $0x5e8] ss:$16 sps:$4 sm:$0xff]  }
 0x11e   : > { %2248 = vmatprep.subr.bf16.mxu1 %v5121_v38  ;;  %v5203_v38 = vld [vmem:[#allocation5 + $0x7e8] ss:$16 sps:$4 sm:$0xff]  }
 0x120   : > { %2196 = vmatpush2.bf16.msra.mxu0 %v5116_v39  ;;  %v5208_v39 = vld [vmem:[#allocation5 + $0x5cc] ss:$16 sps:$4 sm:$0xff]  }
 0x121   : > { %2249 = vmatpush2.bf16.msra.mxu1 %v5119_v40  ;;  %2197 = vmatprep.subr.bf16.mxu0 %v5124_v41  ;;  %v5211_v40 = vld [vmem:[#allocation5 + $0x7cc] ss:$16 sps:$4 sm:$0xff]   ;;  %v5206_v41 = vld [vmem:[#allocation5 + $0x5c8] ss:$16 sps:$4 sm:$0xff]  }
 0x122   : > { %2250 = vmatprep.subr.bf16.mxu1 %v5127_v44  ;;  %v5209_v44 = vld [vmem:[#allocation5 + $0x7c8] ss:$16 sps:$4 sm:$0xff]  }
 0x124   : > { %2198 = vmatpush2.bf16.msra.mxu0 %v5122_v45  ;;  %v5214_v45 = vld [vmem:[#allocation5 + $0x5ac] ss:$16 sps:$4 sm:$0xff]  }
 0x125   : > { %2251 = vmatpush2.bf16.msra.mxu1 %v5125_v46  ;;  %2199 = vmatprep.subr.bf16.mxu0 %v5130_v50  ;;  %v5217_v46 = vld [vmem:[#allocation5 + $0x7ac] ss:$16 sps:$4 sm:$0xff]   ;;  %v5212_v50 = vld [vmem:[#allocation5 + $0x5a8] ss:$16 sps:$4 sm:$0xff]  }
 0x126   : > { %2252 = vmatprep.subr.bf16.mxu1 %v5133_v51  ;;  %v5215_v51 = vld [vmem:[#allocation5 + $0x7a8] ss:$16 sps:$4 sm:$0xff]  }
 0x128   : > { %2200 = vmatpush2.bf16.msra.mxu0 %v5128_v52  ;;  %v5220_v52 = vld [vmem:[#allocation5 + $0x58c] ss:$16 sps:$4 sm:$0xff]  }
 0x129   : > { %2253 = vmatpush2.bf16.msra.mxu1 %v5131_v55  ;;  %2201 = vmatprep.subr.bf16.mxu0 %v5136_v56  ;;  %v5223_v55 = vld [vmem:[#allocation5 + $0x78c] ss:$16 sps:$4 sm:$0xff]   ;;  %v5218_v56 = vld [vmem:[#allocation5 + $0x588] ss:$16 sps:$4 sm:$0xff]  }
 0x12a   : > { %2254 = vmatprep.subr.bf16.mxu1 %v5139_v57  ;;  %v5221_v57 = vld [vmem:[#allocation5 + $0x788] ss:$16 sps:$4 sm:$0xff]  }
 0x12c   : > { %2202 = vmatpush2.bf16.msra.mxu0 %v5134_v59  ;;  %v5226_v59 = vld [vmem:[#allocation5 + $0x56c] ss:$16 sps:$4 sm:$0xff]  }
 0x12d   : > { %2255 = vmatpush2.bf16.msra.mxu1 %v5137_v60  ;;  %2203 = vmatprep.subr.bf16.mxu0 %v5142_v62  ;;  %v5229_v60 = vld [vmem:[#allocation5 + $0x76c] ss:$16 sps:$4 sm:$0xff]   ;;  %v5224_v62 = vld [vmem:[#allocation5 + $0x568] ss:$16 sps:$4 sm:$0xff]  }
 0x12e   : > { %2256 = vmatprep.subr.bf16.mxu1 %v5145_v1  ;;  %v5227_v1 = vld [vmem:[#allocation5 + $0x768] ss:$16 sps:$4 sm:$0xff]  }
 0x130   : > { %2204 = vmatpush2.bf16.msra.mxu0 %v5140_v2  ;;  %v5232_v2 = vld [vmem:[#allocation5 + $0x54c] ss:$16 sps:$4 sm:$0xff]  }
 0x131   : > { %2257 = vmatpush2.bf16.msra.mxu1 %v5143_v3  ;;  %2205 = vmatprep.subr.bf16.mxu0 %v5148_v5  ;;  %v5235_v3 = vld [vmem:[#allocation5 + $0x74c] ss:$16 sps:$4 sm:$0xff]   ;;  %v5230_v5 = vld [vmem:[#allocation5 + $0x548] ss:$16 sps:$4 sm:$0xff]  }
 0x132   : > { %2258 = vmatprep.subr.bf16.mxu1 %v5151_v6  ;;  %v5233_v6 = vld [vmem:[#allocation5 + $0x748] ss:$16 sps:$4 sm:$0xff]  }
 0x134   : > { %2206 = vmatpush2.bf16.msra.mxu0 %v5146_v8  ;;  %v5238_v8 = vld [vmem:[#allocation5 + $0x52c] ss:$16 sps:$4 sm:$0xff]  }
 0x135   : > { %2259 = vmatpush2.bf16.msra.mxu1 %v5149_v9  ;;  %2281 = vmatprep.subr.bf16.mxu0 %v5154_v10  ;;  %v5241_v9 = vld [vmem:[#allocation5 + $0x72c] ss:$16 sps:$4 sm:$0xff]   ;;  %v5236_v10 = vld [vmem:[#allocation5 + $0x528] ss:$16 sps:$4 sm:$0xff]  }
 0x136   : > { %2334 = vmatprep.subr.bf16.mxu1 %v5157_v11  ;;  %v5239_v11 = vld [vmem:[#allocation5 + $0x728] ss:$16 sps:$4 sm:$0xff]  }
 0x137   : > { %2208 = vmatmul.mubr.bf16.vlgmr.msra.gmra.mxu0 %v5991_v12  ;;  %v5172_v12 = vld [vmem:[#allocation5 + $0x48c] ss:$16 sps:$4 sm:$0xff]  }
 0x138   : > { %2261 = vmatmul.mubr.bf16.vlgmr.msra.gmra.mxu1 %v5993_v13  ;;  %2282 = vmatpush1.bf16.msra.mxu0 %v5152_v14  ;;  %v5175_v13 = vld [vmem:[#allocation5 + $0x68c] ss:$16 sps:$4 sm:$0xff]  }
 0x139   : > { %2335 = vmatpush1.bf16.msra.mxu1 %v5155_v15  ;;  %2283 = vmatprep.subr.bf16.mxu0 %v5160_v16  ;;  %v5244_v14 = vld [vmem:[#allocation5 + $0x50c] ss:$16 sps:$4 sm:$0xff]   ;;  %v5242_v16 = vld [vmem:[#allocation5 + $0x508] ss:$16 sps:$4 sm:$0xff]  }
 0x13a   : > { %2336 = vmatprep.subr.bf16.mxu1 %v5163_v17  ;;  %2217 = vmatprep.mubr.bf16.mxu0 %v6000_v37  ;;  %v5181_v37 = vld [vmem:[#allocation5 + $0x66c] ss:$16 sps:$4 sm:$0xff]   ;;  %v5245_v17 = vld [vmem:[#allocation5 + $0x708] ss:$16 sps:$4 sm:$0xff]  }
 0x13b   : > { %2270 = vmatprep.mubr.bf16.mxu1 %v6007_v43  ;;  %v5176_v43 = vld [vmem:[#allocation5 + $0x468] ss:$16 sps:$4 sm:$0xff]   ;;  %v5247_v15 = vld [vmem:[#allocation5 + $0x70c] ss:$16 sps:$4 sm:$0xff]  }
 0x13c   : > { %2284 = vmatpush1.bf16.msra.mxu0 %v5158_v18  ;;  %v5250_v18 = vld [vmem:[#allocation8 + $0x11c] ss:$20 sps:$4 sm:$0xff]  }
 0x13d   : > { %2337 = vmatpush1.bf16.msra.mxu1 %v5161_v19  ;;  %2285 = vmatprep.subr.bf16.mxu0 %v5166_v20  ;;  %v5248_v19 = vld [vmem:[#allocation8 + $0x118] ss:$20 sps:$4 sm:$0xff]   ;;  %v5253_v20 = vld [vmem:[#allocation8 + $0xf4] ss:$20 sps:$4 sm:$0xff]  }
 0x13e   : > { %2338 = vmatprep.subr.bf16.mxu1 %v5169_v21  ;;  %v5251_v21 = vld [vmem:[#allocation8 + $0xf0] ss:$20 sps:$4 sm:$0xff]  }
 0x13f   : > { %2218 = vmatmul.mubr.bf16.gmra.mxu0 %v6005_v42  ;;  %v5187_v42 = vld [vmem:[#allocation5 + $0x64c] ss:$16 sps:$4 sm:$0xff]  }
 0x140   : > { %2271 = vmatmul.mubr.bf16.gmra.mxu1 %v6014_v49  ;;  %2286 = vmatpush1.bf16.msra.mxu0 %v5164_v22  ;;  %v5185_v49 = vld [vmem:[#allocation5 + $0x648] ss:$16 sps:$4 sm:$0xff]   ;;  %v5256_v22 = vld [vmem:[#allocation8 + $0xcc] ss:$20 sps:$4 sm:$0xff]  }
 0x141   : > { %2339 = vmatpush1.bf16.msra.mxu1 %v5167_v23  ;;  %2287 = vmatprep.subr.bf16.mxu0 %v5172_v12  ;;  %v5254_v23 = vld [vmem:[#allocation8 + $0xc8] ss:$20 sps:$4 sm:$0xff]   ;;  %v5259_v12 = vld [vmem:[#allocation8 + $0xa4] ss:$20 sps:$4 sm:$0xff]  }
 0x142   : > { %2340 = vmatprep.subr.bf16.mxu1 %v5175_v13  ;;  %2313 = vmatprep.mubr.bf16.mxu0 %v6021_v63  ;;  %v5199_v63 = vld [vmem:[#allocation5 + $0x60c] ss:$16 sps:$4 sm:$0xff]   ;;  %v5257_v13 = vld [vmem:[#allocation8 + $0xa0] ss:$20 sps:$4 sm:$0xff]  }
 0x143   : > { %2366 = vmatprep.mubr.bf16.mxu1 %v6023_v0  ;;  %v5194_v0 = vld [vmem:[#allocation5 + $0x408] ss:$16 sps:$4 sm:$0xff]  }
 0x144   : > { %2288 = vmatpush1.bf16.msra.mxu0 %v5170_v24  ;;  %v5265_v24 = vld [vmem:[#allocation8 + $0x54] ss:$20 sps:$4 sm:$0xff]  }
 0x145   : > { %2341 = vmatpush1.bf16.msra.mxu1 %v5173_v53  ;;  %2289 = vmatprep.subr.bf16.mxu0 %v5178_v54  ;;  %v5263_v53 = vld [vmem:[#allocation8 + $0x50] ss:$20 sps:$4 sm:$0xff]  }
 0x146   : > { %2342 = vmatprep.subr.bf16.mxu1 %v5181_v37  ;;  %v5349_v54 = vld [vmem:[#allocation8 + $0x370] ss:$20 sps:$4 sm:$0xff]   ;;  %v5351_v37 = vld [vmem:[#allocation8 + $0x374] ss:$20 sps:$4 sm:$0xff]  }
 0x148   : > { %2290 = vmatpush1.bf16.msra.mxu0 %v5176_v43  ;;  %v5268_v43 = vld [vmem:[#allocation8 + $0x2c] ss:$20 sps:$4 sm:$0xff]  }
 0x149   : > { %2343 = vmatpush1.bf16.msra.mxu1 %v5179_v25  ;;  %2291 = vmatprep.subr.bf16.mxu0 %v5184_v26  ;;  %v5266_v25 = vld [vmem:[#allocation8 + $0x28] ss:$20 sps:$4 sm:$0xff]   ;;  %v5271_v26 = vld [vmem:[#allocation8 + $0x4] ss:$20 sps:$4 sm:$0xff]  }
 0x14a   : > { %2344 = vmatprep.subr.bf16.mxu1 %v5187_v42  ;;  %v5359_v42 = vld [vmem:[#allocation8 + $0x320] ss:$20 sps:$4 sm:$0xff]  }
 0x14c   : > { %2292 = vmatpush1.bf16.msra.mxu0 %v5182_v27  ;;  %v5361_v27 = vld [vmem:[#allocation8 + $0x324] ss:$20 sps:$4 sm:$0xff]  }
 0x14d   : > { %2345 = vmatpush1.bf16.msra.mxu1 %v5185_v49  ;;  %2293 = vmatprep.subr.bf16.mxu0 %v5190_v28  ;;  %v5269_v49 = vld [vmem:[#allocation8] ss:$20 sps:$4 sm:$0xff]   ;;  %v5274_v28 = vld [vmem:[#allocation8 + $0x25c] ss:$20 sps:$4 sm:$0xff]  }
 0x14e   : > { %2346 = vmatprep.subr.bf16.mxu1 %v5193_v29  ;;  %v5364_v29 = vld [vmem:[#allocation8 + $0x2f8] ss:$20 sps:$4 sm:$0xff]  }
 0x150   : > { %2294 = vmatpush1.bf16.msra.mxu0 %v5188_v30  ;;  %v5366_v30 = vld [vmem:[#allocation8 + $0x2fc] ss:$20 sps:$4 sm:$0xff]  }
 0x151   : > { %2347 = vmatpush1.bf16.msra.mxu1 %v5191_v31  ;;  %2295 = vmatprep.subr.bf16.mxu0 %v5196_v32  ;;  %v5272_v31 = vld [vmem:[#allocation8 + $0x258] ss:$20 sps:$4 sm:$0xff]   ;;  %v5277_v32 = vld [vmem:[#allocation8 + $0x234] ss:$20 sps:$4 sm:$0xff]  }
 0x152   : > { %2348 = vmatprep.subr.bf16.mxu1 %v5199_v63  ;;  %v5369_v63 = vld [vmem:[#allocation8 + $0x2d0] ss:$20 sps:$4 sm:$0xff]  }
 0x154   : > { %2296 = vmatpush1.bf16.msra.mxu0 %v5194_v0  ;;  %v5371_v0 = vld [vmem:[#allocation8 + $0x2d4] ss:$20 sps:$4 sm:$0xff]  }
 0x155   : > { %2349 = vmatpush1.bf16.msra.mxu1 %v5197_v33  ;;  %2297 = vmatprep.subr.bf16.mxu0 %v5202_v34  ;;  %v5275_v33 = vld [vmem:[#allocation8 + $0x230] ss:$20 sps:$4 sm:$0xff]   ;;  %v5280_v34 = vld [vmem:[#allocation8 + $0x20c] ss:$20 sps:$4 sm:$0xff]  }
 0x156   : > { %2350 = vmatprep.subr.bf16.mxu1 %v5205_v35 }
 0x158   : > { %2298 = vmatpush2.bf16.msra.mxu0 %v5200_v36 }
 0x159   : > { %2351 = vmatpush2.bf16.msra.mxu1 %v5203_v38  ;;  %2299 = vmatprep.subr.bf16.mxu0 %v5208_v39  ;;  %v5374_v38 = vld [vmem:[#allocation8 + $0x2a8] ss:$20 sps:$4 sm:$0xff]   ;;  %v5376_v39 = vld [vmem:[#allocation8 + $0x2ac] ss:$20 sps:$4 sm:$0xff]  }
 0x15a   : > { %2352 = vmatprep.subr.bf16.mxu1 %v5211_v40  ;;  %v5278_v40 = vld [vmem:[#allocation8 + $0x208] ss:$20 sps:$4 sm:$0xff]  }
 0x15c   : > { %2300 = vmatpush2.bf16.msra.mxu0 %v5206_v41  ;;  %v5283_v41 = vld [vmem:[#allocation8 + $0x1e4] ss:$20 sps:$4 sm:$0xff]  }
 0x15d   : > { %2353 = vmatpush2.bf16.msra.mxu1 %v5209_v44  ;;  %2301 = vmatprep.subr.bf16.mxu0 %v5214_v45 }
 0x15e   : > { %2354 = vmatprep.subr.bf16.mxu1 %v5217_v46  ;;  %v5379_v46 = vld [vmem:[#allocation8 + $0x280] ss:$20 sps:$4 sm:$0xff]  }
 0x160   : > { %2302 = vmatpush2.bf16.msra.mxu0 %v5212_v50  ;;  %v5381_v50 = vld [vmem:[#allocation8 + $0x284] ss:$20 sps:$4 sm:$0xff]  }
 0x161   : > { %2355 = vmatpush2.bf16.msra.mxu1 %v5215_v51  ;;  %2303 = vmatprep.subr.bf16.mxu0 %v5220_v52  ;;  %v5281_v51 = vld [vmem:[#allocation8 + $0x1e0] ss:$20 sps:$4 sm:$0xff]   ;;  %v5286_v52 = vld [vmem:[#allocation8 + $0x1bc] ss:$20 sps:$4 sm:$0xff]  }
 0x162   : > { %2356 = vmatprep.subr.bf16.mxu1 %v5223_v55 }
 0x164   : > { %2304 = vmatpush2.bf16.msra.mxu0 %v5218_v56 }
 0x165   : > { %2357 = vmatpush2.bf16.msra.mxu1 %v5221_v57  ;;  %2305 = vmatprep.subr.bf16.mxu0 %v5226_v59  ;;  %v663_v57 = vlaneseq  ;;  %v5384_v59 = vld [vmem:[#allocation8 + $0x4d8] ss:$20 sps:$4 sm:$0xff]  }
 0x166   : > { %2358 = vmatprep.subr.bf16.mxu1 %v5229_v60  ;;  %v5386_v60 = vld [vmem:[#allocation8 + $0x4dc] ss:$20 sps:$4 sm:$0xff]  }
 0x168   : > { %2306 = vmatpush2.bf16.msra.mxu0 %v5224_v62  ;;  %v5284_v62 = vld [vmem:[#allocation8 + $0x1b8] ss:$20 sps:$4 sm:$0xff]  }
 0x169   : > { %2359 = vmatpush2.bf16.msra.mxu1 %v5227_v1  ;;  %2307 = vmatprep.subr.bf16.mxu0 %v5232_v2  ;;  %v5289_v1 = vld [vmem:[#allocation8 + $0x194] ss:$20 sps:$4 sm:$0xff]  }
 0x16a   : > { %2360 = vmatprep.subr.bf16.mxu1 %v5235_v3 }
 0x16c   : > { %2308 = vmatpush2.bf16.msra.mxu0 %v5230_v5  ;;  %v6084_v5 = vshrl.u32 %v663_v57, 7 }
 0x16d   : > { %2361 = vmatpush2.bf16.msra.mxu1 %v5233_v6  ;;  %2309 = vmatprep.subr.bf16.mxu0 %v5238_v8  ;;  %v5387_v6 = vld [vmem:[#allocation8 + $0x4b0] ss:$20 sps:$4 sm:$0xff]   ;;  %v5389_v8 = vld [vmem:[#allocation8 + $0x4b4] ss:$20 sps:$4 sm:$0xff]  }
 0x16e   : > { %2362 = vmatprep.subr.bf16.mxu1 %v5241_v9 }
 0x170   : > { %2310 = vmatpush2.bf16.msra.mxu0 %v5236_v10 }
 0x171   : > { %2363 = vmatpush2.bf16.msra.mxu1 %v5239_v11  ;;  %2311 = vmatprep.subr.bf16.mxu0 %v5244_v14  ;;  %v5287_v11 = vld [vmem:[#allocation8 + $0x190] ss:$20 sps:$4 sm:$0xff]   ;;  %v5392_v14 = vld [vmem:[#allocation8 + $0x48c] ss:$20 sps:$4 sm:$0xff]  }
 0x172   : > { %2364 = vmatprep.subr.bf16.mxu1 %v5247_v15  ;;  %v5292_v15 = vld [vmem:[#allocation8 + $0x16c] ss:$20 sps:$4 sm:$0xff]  }
 0x174   : > { %2312 = vmatpush2.bf16.msra.mxu0 %v5242_v16  ;;  %v5390_v16 = vld [vmem:[#allocation8 + $0x488] ss:$20 sps:$4 sm:$0xff]  }
 0x175   : > { %2365 = vmatpush2.bf16.msra.mxu1 %v5245_v17  ;;  %3462 = vmatprep.subr.bf16.mxu0 %v5250_v18  ;;  %v669_v17 = vsub.s32 1, %v6084_v5  ;;  %v6091_v18 = vld [vmem:[#allocation7] sm:$0xf] }
 0x177   : > { %2314 = vmatmul.mubr.bf16.vlgmr.msra.gmra.mxu0 %v6033_v47  ;;  %v5262_v47 = vld [vmem:[#allocation8 + $0x7c] ss:$20 sps:$4 sm:$0xff]   ;;  %v6073_v35 = vpop.f32.mrf.mxu0 }
 0x178   : > { %2367 = vmatmul.mubr.bf16.vlgmr.msra.gmra.mxu1 %v6035_v48  ;;  %2323 = vmatprep.mubr.bf16.mxu0 %v6039_v58  ;;  %v5344_v48 = vld [vmem:[#allocation8 + $0x398] ss:$20 sps:$4 sm:$0xff]   ;;  %v5346_v58 = vld [vmem:[#allocation8 + $0x39c] ss:$20 sps:$4 sm:$0xff]   ;;  %v6075_v36 = vpop.f32.mrf.mxu1 }
 0x179   : > { %2376 = vmatprep.mubr.bf16.mxu1 %v6043_v61  ;;  %3463 = vmatpush1.bf16.msra.mxu0 %v5248_v19  ;;  %v5260_v61 = vld [vmem:[#allocation8 + $0x78] ss:$20 sps:$4 sm:$0xff]   ;;  %v1999_v44 = vpop.f32.mrf.mxu0  ;;  %v665_v19 = vsub.s32 0, %v6084_v5 }
 0x17a   : > { %3464 = vmatprep.subr.bf16.mxu0 %v5253_v20  ;;  %3515 = vmatprep.subr.bf16.mxu1 %v5346_v58  ;;  %v6077_v45 = vpop.f32.mrf.mxu1 }
 0x17b   : > { %3516 = vmatpush1.bf16.msra.mxu1 %v5344_v48  ;;  %v2001_v55 = vpop.f32.mrf.mxu0  ;;  %v5398_v48 = vld [vmem:[#allocation8 + $0x43c] ss:$20 sps:$4 sm:$0xff]   ;;  %v666_v58 = vrot.slane %v6091_v18, %v665_v19 }
 0x17c   : > { %3517 = vmatprep.subr.bf16.mxu1 %v5351_v37  ;;  %v6079_v56 = vpop.f32.mrf.mxu1  ;;  %v5396_v37 = vld [vmem:[#allocation8 + $0x438] ss:$20 sps:$4 sm:$0xff]  }
 0x17d   : > { %3465 = vmatpush1.bf16.msra.mxu0 %v5251_v21  ;;  %v2003_v2 = vpop.f32.mrf.mxu0 }
 0x17e   : > { %3466 = vmatprep.subr.bf16.mxu0 %v5256_v22  ;;  %v6081_v3 = vpop.f32.mrf.mxu1  ;;  %v5290_v22 = vld [vmem:[#allocation8 + $0x168] ss:$20 sps:$4 sm:$0xff]  }
 0x17f   : > { %2324 = vmatmul.mubr.bf16.gmra.mxu0 %v6051_v4  ;;  %3518 = vmatpush1.bf16.msra.mxu1 %v5349_v54  ;;  %v5354_v4 = vld [vmem:[#allocation8 + $0x348] ss:$20 sps:$4 sm:$0xff]   ;;  %v6086_v9 = vpop.f32.mrf.mxu0  ;;  %v5298_v54 = vld [vmem:[#allocation8 + $0x124] ss:$20 sps:$4 sm:$0xff]  }
 0x180   : > { %2377 = vmatmul.mubr.bf16.gmra.mxu1 %v6053_v7  ;;  %v5356_v7 = vld [vmem:[#allocation8 + $0x34c] ss:$20 sps:$4 sm:$0xff]   ;;  %v6088_v10 = vpop.f32.mrf.mxu1 }
 0x181   : > { %3467 = vmatpush1.bf16.msra.mxu0 %v5254_v23  ;;  %3519 = vmatprep.subr.bf16.mxu1 %v5356_v7  ;;  %v2009_v20 = vpop.f32.mrf.mxu0  ;;  %v5295_v23 = vld [vmem:[#allocation8 + $0x144] ss:$20 sps:$4 sm:$0xff]  }
 0x182   : > { %3468 = vmatprep.subr.bf16.mxu0 %v5259_v12  ;;  %v2062_v21 = vpop.f32.mrf.mxu1  ;;  %v5393_v12 = vld [vmem:[#allocation8 + $0x460] ss:$20 sps:$4 sm:$0xff]  }
 0x183   : > { %3520 = vmatpush1.bf16.msra.mxu1 %v5354_v4  ;;  %v1998_v4 = vadd.f32 %v6073_v35, %v666_v58 }
 0x184   : > { %3521 = vmatprep.subr.bf16.mxu1 %v5361_v27 }
 0x185   : > { %3469 = vmatpush1.bf16.msra.mxu0 %v5257_v13  ;;  %v5395_v13 = vld [vmem:[#allocation8 + $0x464] ss:$20 sps:$4 sm:$0xff]  }
 0x186   : > { %3470 = vmatprep.subr.bf16.mxu0 %v5262_v47  ;;  %v670_v47 = vrot.slane %v6091_v18, %v669_v17 }
 0x187   : > { %3522 = vmatpush1.bf16.msra.mxu1 %v5359_v42 }
 0x188   : > { %3523 = vmatprep.subr.bf16.mxu1 %v5366_v30 }
 0x189   : > { %3471 = vmatpush1.bf16.msra.mxu0 %v5260_v61  ;;  %v2011_v61 = vpop.f32.mrf.mxu0 }
 0x18a   : > { %3472 = vmatprep.subr.bf16.mxu0 %v5265_v24  ;;  %v2064_v24 = vpop.f32.mrf.mxu1 }
 0x18b   : > { %3524 = vmatpush1.bf16.msra.mxu1 %v5364_v29  ;;  %v2013_v7 = vpop.f32.mrf.mxu0  ;;  %v2051_v29 = vadd.f32 %v6075_v36, %v1998_v4 }
 0x18c   : > { %3525 = vmatprep.subr.bf16.mxu1 %v5371_v0 }
 0x18d   : > { %3473 = vmatpush1.bf16.msra.mxu0 %v5263_v53  ;;  %v5293_v53 = vld [vmem:[#allocation8 + $0x140] ss:$20 sps:$4 sm:$0xff]  }
 0x18e   : > { %3474 = vmatprep.subr.bf16.mxu0 %v5268_v43  ;;  %v2000_v43 = vadd.f32 %v1999_v44, %v670_v47  ;;  %v2008_v44 = vadd.f32 %v6086_v9, %v666_v58 }
 0x18f   : > { %3526 = vmatpush1.bf16.msra.mxu1 %v5369_v63 }
 0x190   : > { %3527 = vmatprep.subr.bf16.mxu1 %v5376_v39 }
 0x191   : > { %3475 = vmatpush1.bf16.msra.mxu0 %v5266_v25  ;;  %v2066_v25 = vpop.f32.mrf.mxu1 }
 0x192   : > { %3476 = vmatprep.subr.bf16.mxu0 %v5271_v26  ;;  %v2002_v26 = vadd.f32 %v2001_v55, %v666_v58 }
 0x193   : > { %3528 = vmatpush1.bf16.msra.mxu1 %v5374_v38 }
 0x194   : > { %3529 = vmatprep.subr.bf16.mxu1 %v5381_v50  ;;  %v2055_v63 = vadd.f32 %v6079_v56, %v2002_v26  ;;  %v2012_v50 = vadd.f32 %v2011_v61, %v666_v58  ;;  %v5402_v56 = vld [vmem:[#allocation8 + $0x3e8] ss:$20 sps:$4 sm:$0xff]  }
 0x195   : > { %3477 = vmatpush1.bf16.msra.mxu0 %v5269_v49  ;;  %v2053_v49 = vadd.f32 %v6077_v45, %v2000_v43  ;;  %v5410_v43 = vld [vmem:[#allocation8 + $0x3a4] ss:$20 sps:$4 sm:$0xff]  }
 0x196   : > { %3478 = vmatprep.subr.bf16.mxu0 %v5274_v28  ;;  %v2004_v28 = vadd.f32 %v2003_v2, %v670_v47  ;;  %v2014_v2 = vadd.f32 %v2013_v7, %v670_v47 }
 0x197   : > { %3530 = vmatpush1.bf16.msra.mxu1 %v5379_v46  ;;  %v5404_v46 = vld [vmem:[#allocation8 + $0x3ec] ss:$20 sps:$4 sm:$0xff]  }
 0x198   : > { %3531 = vmatprep.subr.bf16.mxu1 %v5386_v60  ;;  %v2057_v39 = vadd.f32 %v6081_v3, %v2004_v28  ;;  %v5304_v28 = vld [vmem:[#allocation8 + $0xd4] ss:$20 sps:$4 sm:$0xff]  }
 0x199   : > { %3479 = vmatpush2.bf16.msra.mxu0 %v5272_v31 }
 0x19a   : > { %3480 = vmatprep.subr.bf16.mxu0 %v5277_v32  ;;  %v5401_v32 = vld [vmem:[#allocation8 + $0x414] ss:$20 sps:$4 sm:$0xff]  }
 0x19b   : > { %3532 = vmatpush2.bf16.msra.mxu1 %v5384_v59 }
 0x19c   : > { %3533 = vmatprep.subr.bf16.mxu1 %v5389_v8 }
 0x19d   : > { %3481 = vmatpush2.bf16.msra.mxu0 %v5275_v33  ;;  %v5399_v33 = vld [vmem:[#allocation8 + $0x410] ss:$20 sps:$4 sm:$0xff]  }
 0x19e   : > { %3482 = vmatprep.subr.bf16.mxu0 %v5280_v34 }
 0x19f   : > { %3534 = vmatpush2.bf16.msra.mxu1 %v5387_v6  ;;  %v2061_v6 = vadd.f32 %v6088_v10, %v2008_v44  ;;  %v5314_v44 = vld [vmem:[#allocation8 + $0x30] ss:$20 sps:$4 sm:$0xff]  }
 0x1a0   : > { %3535 = vmatprep.subr.bf16.mxu1 %v5392_v14  ;;  %v5407_v14 = vld [vmem:[#allocation8 + $0x3c4] ss:$20 sps:$4 sm:$0xff]  }
 0x1a1   : > { %3483 = vmatpush2.bf16.msra.mxu0 %v5278_v40  ;;  %v2010_v40 = vadd.f32 %v2009_v20, %v670_v47 }
 0x1a2   : > { %3484 = vmatprep.subr.bf16.mxu0 %v5283_v41 }
 0x1a3   : > { %3536 = vmatpush2.bf16.msra.mxu1 %v5390_v16 }
 0x1a4   : > { %3537 = vmatprep.subr.bf16.mxu1 %v5395_v13 }
 0x1a5   : > { %3485 = vmatpush2.bf16.msra.mxu0 %v5281_v51 }
 0x1a6   : > { %3486 = vmatprep.subr.bf16.mxu0 %v5286_v52 }
 0x1a7   : > { %3538 = vmatpush2.bf16.msra.mxu1 %v5393_v12 }
 0x1a8   : > { %3539 = vmatprep.subr.bf16.mxu1 %v5398_v48 }
 0x1a9   : > { %3487 = vmatpush2.bf16.msra.mxu0 %v5284_v62 }
 0x1aa   : > { %3488 = vmatprep.subr.bf16.mxu0 %v5289_v1  ;;  %v2063_v1 = vadd.f32 %v2062_v21, %v2010_v40  ;;  %v2067_v21 = vadd.f32 %v2066_v25, %v2014_v2  ;;  %v5311_v40 = vld [vmem:[#allocation8 + $0x58] ss:$20 sps:$4 sm:$0xff]   ;;  %v5337_v2 = vld [vmem:[#allocation8 + $0x19c] ss:$20 sps:$4 sm:$0xff]  }
 0x1ab   : > { %3540 = vmatpush2.bf16.msra.mxu1 %v5396_v37 }
 0x1ac   : > { %3541 = vmatprep.subr.bf16.mxu1 %v5401_v32 }
 0x1ad   : > { %3489 = vmatpush2.bf16.msra.mxu0 %v5287_v11 }
 0x1ae   : > { %3490 = vmatprep.subr.bf16.mxu0 %v5292_v15  ;;  %v2065_v15 = vadd.f32 %v2064_v24, %v2012_v50  ;;  %v5301_v24 = vld [vmem:[#allocation8 + $0xfc] ss:$20 sps:$4 sm:$0xff]   ;;  %v5320_v50 = vld [vmem:[#allocation8 + $0x260] ss:$20 sps:$4 sm:$0xff]  }
 0x1af   : > { %3542 = vmatpush2.bf16.msra.mxu1 %v5399_v33  ;;  %v5307_v33 = vld [vmem:[#allocation8 + $0xac] ss:$20 sps:$4 sm:$0xff]  }
 0x1b0   : > { %3543 = vmatprep.subr.bf16.mxu1 %v5404_v46  ;;  %v5322_v46 = vld [vmem:[#allocation8 + $0x264] ss:$20 sps:$4 sm:$0xff]  }
 0x1b1   : > { %3491 = vmatpush2.bf16.msra.mxu0 %v5290_v22 }
 0x1b2   : > { %3492 = vmatprep.subr.bf16.mxu0 %v5295_v23  ;;  %v5405_v23 = vld [vmem:[#allocation8 + $0x3c0] ss:$20 sps:$4 sm:$0xff]  }
 0x1b3   : > { %3544 = vmatpush2.bf16.msra.mxu1 %v5402_v56  ;;  %v5326_v56 = vld [vmem:[#allocation8 + $0x210] ss:$20 sps:$4 sm:$0xff]  }
 0x1b4   : > { %3545 = vmatprep.subr.bf16.mxu1 %v5407_v14  ;;  %v5347_v14 = vld [vmem:[#allocation8 + $0x268] ss:$20 sps:$4 sm:$0xff]  }
 0x1b5   : > { %3493 = vmatpush2.bf16.msra.mxu0 %v5293_v53  ;;  %v5296_v53 = vld [vmem:[#allocation8 + $0x120] ss:$20 sps:$4 sm:$0xff]  }
 0x1b6   : > { %3568 = vmatprep.subr.bf16.mxu0 %v5298_v54 }
 0x1b7   : > { %v2103_v42 = vpop.f32.mrf.mxu0  ;;  %3546 = vmatpush2.bf16.msra.mxu1 %v5405_v23  ;;  %v5358_v23 = vld [vmem:[#allocation8 + $0xd8] ss:$20 sps:$4 sm:$0xff]  }
 0x1b8   : > { %v2156_v27 = vpop.f32.mrf.mxu1  ;;  %v2104_v34 = vadd.f32 %v2103_v42, %v2051_v29  ;;  %3621 = vmatprep.subr.bf16.mxu1 %v5410_v43  ;;  %v5382_v43 = vld [vmem:[#allocation8 + $0x150] ss:$20 sps:$4 sm:$0xff]  }
 0x1b9   : > { %v2105_v30 = vpop.f32.mrf.mxu0 }
 0x1ba   : > { %v2158_v31 = vpop.f32.mrf.mxu1  ;;  %v2106_v0 = vadd.f32 %v2105_v30, %v2053_v49  ;;  %v2157_v59 = vadd.f32 %v2156_v27, %v2104_v34  ;;  %v5299_v27 = vld [vmem:[#allocation8 + $0xf8] ss:$20 sps:$4 sm:$0xff]   ;;  %v5305_v34 = vld [vmem:[#allocation8 + $0xa8] ss:$20 sps:$4 sm:$0xff]  }
 0x1bb   : > { %v2107_v35 = vpop.f32.mrf.mxu0 }
 0x1bc   : > { %v2160_v38 = vpop.f32.mrf.mxu1  ;;  %v2108_v41 = vadd.f32 %v2107_v35, %v2055_v63  ;;  %v2159_v51 = vadd.f32 %v2158_v31, %v2106_v0  ;;  %v2387_v12 = vmax.f32 %v2157_v59, 0.0  ;;  %v5302_v63 = vld [vmem:[#allocation8 + $0xd0] ss:$20 sps:$4 sm:$0xff]   ;;  %v5331_v59 = vld [vmem:[#allocation8 + $0x1ec] ss:$20 sps:$4 sm:$0xff]  }
 0x1bd   : > { %v2109_v45 = vpop.f32.mrf.mxu0  ;;  %v5310_v35 = vld [vmem:[#allocation8 + $0x84] ss:$20 sps:$4 sm:$0xff]  }
 0x1be   : > { %v2162_v36 = vpop.f32.mrf.mxu1  ;;  %v2161_v52 = vadd.f32 %v2160_v38, %v2108_v41  ;;  %v2110_v55 = vadd.f32 %v2109_v45, %v2057_v39  ;;  %v2388_v16 = vmax.f32 %v2159_v51, 0.0  ;;  %v5308_v38 = vld [vmem:[#allocation8 + $0x80] ss:$20 sps:$4 sm:$0xff]   ;;  %v5313_v39 = vld [vmem:[#allocation8 + $0x5c] ss:$20 sps:$4 sm:$0xff]  }
 0x1bf   : > { %v2113_v60 = vpop.f32.mrf.mxu0  ;;  %v5316_v41 = vld [vmem:[#allocation8 + $0x34] ss:$20 sps:$4 sm:$0xff]   ;;  %v5319_v45 = vld [vmem:[#allocation8 + $0xc] ss:$20 sps:$4 sm:$0xff]   ;;  %v5325_v51 = vld [vmem:[#allocation8 + $0x23c] ss:$20 sps:$4 sm:$0xff]  }
 0x1c0   : > { %v2166_v62 = vpop.f32.mrf.mxu1  ;;  %v2163_v3 = vadd.f32 %v2162_v36, %v2110_v55  ;;  %v2391_v8 = vmax.f32 %v2161_v52, 0.0  ;;  %v2114_v13 = vadd.f32 %v2113_v60, %v2061_v6  ;;  %v5317_v36 = vld [vmem:[#allocation8 + $0x8] ss:$20 sps:$4 sm:$0xff]   ;;  %v5323_v52 = vld [vmem:[#allocation8 + $0x238] ss:$20 sps:$4 sm:$0xff]  }
 0x1c1   : > { %v2115_v9 = vpop.f32.mrf.mxu0  ;;  %v5328_v55 = vld [vmem:[#allocation8 + $0x214] ss:$20 sps:$4 sm:$0xff]  }
 0x1c2   : > { %v2168_v11 = vpop.f32.mrf.mxu1  ;;  %v2392_v20 = vmax.f32 %v2163_v3, 0.0  ;;  %v2116_v22 = vadd.f32 %v2115_v9, %v2063_v1  ;;  %v6109_v10 = vpack.c.bf16 %v2391_v8, %v2387_v12  ;;  %v2167_v42 = vadd.f32 %v2166_v62, %v2114_v13  ;;  %v5329_v60 = vld [vmem:[#allocation8 + $0x1e8] ss:$20 sps:$4 sm:$0xff]   ;;  %v5334_v62 = vld [vmem:[#allocation8 + $0x1c4] ss:$20 sps:$4 sm:$0xff]  }
 0x1c3   : > { %v2117_v48 = vpop.f32.mrf.mxu0  ;;  %v5332_v1 = vld [vmem:[#allocation8 + $0x1c0] ss:$20 sps:$4 sm:$0xff]   ;;  %v5335_v3 = vld [vmem:[#allocation8 + $0x198] ss:$20 sps:$4 sm:$0xff]   ;;  %v5338_v8 = vld [vmem:[#allocation8 + $0x170] ss:$20 sps:$4 sm:$0xff]  }
 0x1c4   : > { %v2170_v58 = vpop.f32.mrf.mxu1  ;;  %v6107_v47 = vpack.c.bf16 %v2392_v20, %v2388_v16  ;;  %v2118_v61 = vadd.f32 %v2117_v48, %v2065_v15  ;;  %v2169_v4 = vadd.f32 %v2168_v11, %v2116_v22  ;;  %v2395_v31 = vmax.f32 %v2167_v42, 0.0  ;;  %v5340_v6 = vld [vmem:[#allocation8 + $0x174] ss:$20 sps:$4 sm:$0xff]   ;;  %v5343_v9 = vld [vmem:[#allocation8 + $0x14c] ss:$20 sps:$4 sm:$0xff]  }
 0x1c5   : > { %v2119_v54 = vpop.f32.mrf.mxu0  ;;  %v5341_v11 = vld [vmem:[#allocation8 + $0x148] ss:$20 sps:$4 sm:$0xff]   ;;  %v5352_v16 = vld [vmem:[#allocation8 + $0x240] ss:$20 sps:$4 sm:$0xff]   ;;  %v5357_v22 = vld [vmem:[#allocation8 + $0x218] ss:$20 sps:$4 sm:$0xff]  }
 0x1c6   : > { %v2172_v37 = vpop.f32.mrf.mxu1  ;;  %v2120_v7 = vadd.f32 %v2119_v54, %v2067_v21  ;;  %v2171_v26 = vadd.f32 %v2170_v58, %v2118_v61  ;;  %3494 = vmatprep.mubr.bf16.mxu0 %v6107_v47  ;;  %v2396_v29 = vmax.f32 %v2169_v4, 0.0  ;;  %v5348_v15 = vld [vmem:[#allocation8 + $0x128] ss:$20 sps:$4 sm:$0xff]   ;;  %v5353_v20 = vld [vmem:[#allocation8 + $0x100] ss:$20 sps:$4 sm:$0xff]  }
 0x1c7   : > { %3495 = vmatmul.mubr.bf16.vlgmr.msra.gmra.mxu0 %v6109_v10  ;;  %v5362_v12 = vld [vmem:[#allocation8 + $0x1f0] ss:$20 sps:$4 sm:$0xff]   ;;  %v5367_v48 = vld [vmem:[#allocation8 + $0x1c8] ss:$20 sps:$4 sm:$0xff]   ;;  %v5372_v21 = vld [vmem:[#allocation8 + $0x1a0] ss:$20 sps:$4 sm:$0xff]  }
 0x1c8   : > { %v2173_v25 = vadd.f32 %v2172_v37, %v2120_v7  ;;  %3569 = vmatpush1.bf16.msra.mxu0 %v5296_v53  ;;  %v2399_v49 = vmax.f32 %v2171_v26, 0.0  ;;  %v5363_v13 = vld [vmem:[#allocation8 + $0xb0] ss:$20 sps:$4 sm:$0xff]   ;;  %v5368_v58 = vld [vmem:[#allocation8 + $0x88] ss:$20 sps:$4 sm:$0xff]  }
 0x1c9   : > { %3570 = vmatprep.subr.bf16.mxu0 %v5301_v24  ;;  %v5373_v61 = vld [vmem:[#allocation8 + $0x60] ss:$20 sps:$4 sm:$0xff]   ;;  %v5377_v53 = vld [vmem:[#allocation8 + $0x178] ss:$20 sps:$4 sm:$0xff]  }
 0x1ca   : > { %v2400_v30 = vmax.f32 %v2173_v25, 0.0  ;;  %v6115_v0 = vpack.c.bf16 %v2399_v49, %v2395_v31  ;;  %v5378_v24 = vld [vmem:[#allocation8 + $0x38] ss:$20 sps:$4 sm:$0xff]  }
 0x1cc   : > { %v6113_v32 = vpack.c.bf16 %v2400_v30, %v2396_v29  ;;  %3571 = vmatpush1.bf16.msra.mxu0 %v5299_v27  ;;  %v677_v29 = vsub.s32 3, %v6084_v5  ;;  %v673_v30 = vsub.s32 2, %v6084_v5 }
 0x1cd   : > { %3572 = vmatprep.subr.bf16.mxu0 %v5304_v28 }
 0x1ce   : > { %3504 = vmatprep.mubr.bf16.mxu0 %v6113_v32 }
 0x1cf   : > { %3505 = vmatmul.mubr.bf16.gmra.mxu0 %v6115_v0 }
 0x1d0   : > { %3573 = vmatpush1.bf16.msra.mxu0 %v5302_v63  ;;  %3600 = vmatprep.mubr.bf16.mxu0 %v6107_v47 }
 0x1d1   : > { %3574 = vmatprep.subr.bf16.mxu0 %v5307_v33  ;;  %v678_v33 = vrot.slane %v6091_v18, %v677_v29 }
 0x1d4   : > { %3575 = vmatpush1.bf16.msra.mxu0 %v5305_v34 }
 0x1d5   : > { %3576 = vmatprep.subr.bf16.mxu0 %v5310_v35 }
 0x1d8   : > { %3577 = vmatpush1.bf16.msra.mxu0 %v5308_v38 }
 0x1d9   : > { %3578 = vmatprep.subr.bf16.mxu0 %v5313_v39 }
 0x1dc   : > { %3579 = vmatpush1.bf16.msra.mxu0 %v5311_v40 }
 0x1dd   : > { %3580 = vmatprep.subr.bf16.mxu0 %v5316_v41 }
 0x1e0   : > { %3581 = vmatpush1.bf16.msra.mxu0 %v5314_v44 }
 0x1e1   : > { %3582 = vmatprep.subr.bf16.mxu0 %v5319_v45 }
 0x1e4   : > { %3583 = vmatpush1.bf16.msra.mxu0 %v5317_v36 }
 0x1e5   : > { %3584 = vmatprep.subr.bf16.mxu0 %v5322_v46 }
 0x1e8   : > { %3585 = vmatpush2.bf16.msra.mxu0 %v5320_v50 }
 0x1e9   : > { %3586 = vmatprep.subr.bf16.mxu0 %v5325_v51 }
 0x1ec   : > { %3587 = vmatpush2.bf16.msra.mxu0 %v5323_v52 }
 0x1ed   : > { %3588 = vmatprep.subr.bf16.mxu0 %v5328_v55 }
 0x1f0   : > { %3589 = vmatpush2.bf16.msra.mxu0 %v5326_v56 }
 0x1f1   : > { %3590 = vmatprep.subr.bf16.mxu0 %v5331_v59 }
 0x1f4   : > { %3591 = vmatpush2.bf16.msra.mxu0 %v5329_v60 }
 0x1f5   : > { %3592 = vmatprep.subr.bf16.mxu0 %v5334_v62 }
 0x1f7   : > { %v2209_v54 = vpop.f32.mrf.mxu0 }
 0x1f8   : > { %3593 = vmatpush2.bf16.msra.mxu0 %v5332_v1  ;;  %v2262_v37 = vpop.f32.mrf.mxu1 }
 0x1f9   : > { %3594 = vmatprep.subr.bf16.mxu0 %v5337_v2  ;;  %v2211_v4 = vpop.f32.mrf.mxu0 }
 0x1fa   : > { %v2264_v7 = vpop.f32.mrf.mxu1  ;;  %v2212_v35 = vadd.f32 %v2211_v4, %v678_v33 }
 0x1fb   : > { %v2213_v26 = vpop.f32.mrf.mxu0 }
 0x1fc   : > { %3595 = vmatpush2.bf16.msra.mxu0 %v5335_v3  ;;  %v2266_v42 = vpop.f32.mrf.mxu1  ;;  %v2265_v36 = vadd.f32 %v2264_v7, %v2212_v35  ;;  %v5411_v35 = vld [vmem:[#allocation8 + $0x378] ss:$20 sps:$4 sm:$0xff]  }
 0x1fd   : > { %3596 = vmatprep.subr.bf16.mxu0 %v5340_v6  ;;  %v2215_v25 = vpop.f32.mrf.mxu0 }
 0x1fe   : > { %v2268_v27 = vpop.f32.mrf.mxu1  ;;  %v2216_v46 = vadd.f32 %v2215_v25, %v678_v33  ;;  %v5408_v25 = vld [vmem:[#allocation8 + $0x3a0] ss:$20 sps:$4 sm:$0xff]  }
 0x1ff   : > { %v2219_v49 = vpop.f32.mrf.mxu0 }
 0x200   : > { %3597 = vmatpush2.bf16.msra.mxu0 %v5338_v8  ;;  %v2272_v28 = vpop.f32.mrf.mxu1 }
 0x201   : > { %3598 = vmatprep.subr.bf16.mxu0 %v5343_v9  ;;  %v2221_v31 = vpop.f32.mrf.mxu0 }
 0x202   : > { %v2274_v63 = vpop.f32.mrf.mxu1  ;;  %v2222_v62 = vadd.f32 %v2221_v31, %v678_v33  ;;  %v5413_v31 = vld [vmem:[#allocation8 + $0x37c] ss:$20 sps:$4 sm:$0xff]  }
 0x203   : > { %v2223_v34 = vpop.f32.mrf.mxu0 }
 0x204   : > { %3599 = vmatpush2.bf16.msra.mxu0 %v5341_v11 }
 0x205   : > { %4668 = vmatprep.subr.bf16.mxu0 %v5347_v14  ;;  %v2225_v39 = vpop.f32.mrf.mxu0 }
 0x207   : > { %3601 = vmatmul.mubr.bf16.vlgmr.msra.gmra.mxu0 %v6109_v10 }
 0x208   : > { %3610 = vmatprep.mubr.bf16.mxu0 %v6113_v32  ;;  %4669 = vmatpush3.bf16.msra.mxu0 %v5348_v15 }
 0x209   : > { %4670 = vmatprep.subr.bf16.mxu0 %v5352_v16 }
 0x20c   : > { %4671 = vmatpush3.bf16.msra.mxu0 %v5353_v20 }
 0x20d   : > { %4672 = vmatprep.subr.bf16.mxu0 %v5357_v22  ;;  %v2275_v22 = vadd.f32 %v2274_v63, %v2222_v62  ;;  %v5429_v62 = vld [vmem:[#allocation8 + $0x288] ss:$20 sps:$4 sm:$0xff]  }
 0x20f   : > { %3611 = vmatmul.mubr.bf16.gmra.mxu0 %v6115_v0 }
 0x210   : > { %4673 = vmatpush3.bf16.msra.mxu0 %v5358_v23  ;;  %3706 = vmatprep.mubr.bf16.mxu0 %v6107_v47  ;;  %v5383_v47 = vld [vmem:[#allocation8 + $0x10] ss:$20 sps:$4 sm:$0xff]   ;;  %v2226_v23 = vadd.f32 %v2225_v39, %v678_v33  ;;  %v5416_v39 = vld [vmem:[#allocation8 + $0x354] ss:$20 sps:$4 sm:$0xff]  }
 0x211   : > { %4674 = vmatprep.subr.bf16.mxu0 %v5362_v12 }
 0x214   : > { %4675 = vmatpush3.bf16.msra.mxu0 %v5363_v13 }
 0x215   : > { %4676 = vmatprep.subr.bf16.mxu0 %v5367_v48 }
 0x218   : > { %4677 = vmatpush3.bf16.msra.mxu0 %v5368_v58 }
 0x219   : > { %4678 = vmatprep.subr.bf16.mxu0 %v5372_v21 }
 0x21c   : > { %4679 = vmatpush3.bf16.msra.mxu0 %v5373_v61 }
 0x21d   : > { %4680 = vmatprep.subr.bf16.mxu0 %v5377_v53 }
 0x220   : > { %4681 = vmatpush3.bf16.msra.mxu0 %v5378_v24 }
 0x221   : > { %4682 = vmatprep.subr.bf16.mxu0 %v5382_v43 }
 0x224   : > { %4683 = vmatpush3.bf16.msra.mxu0 %v5383_v47 }
 0x227   : > { %3707 = vmatmul.mubr.bf16.vlgmr.msra.gmra.mxu0 %v6109_v10  ;;  %v674_v10 = vrot.slane %v6091_v18, %v673_v30  ;;  %v2269_v18 = vadd.f32 %v2268_v27, %v2216_v46 }
 0x228   : > { %3714 = vmatprep.mubr.bf16.mxu0 %v6113_v32  ;;  %v2276_v32 = vpop.f32.mrf.mxu1 }
 0x229   : > { %v2210_v38 = vadd.f32 %v2209_v54, %v674_v10  ;;  %v2214_v41 = vadd.f32 %v2213_v26, %v674_v10  ;;  %v2220_v2 = vadd.f32 %v2219_v49, %v674_v10  ;;  %v2224_v8 = vadd.f32 %v2223_v34, %v674_v10 }
 0x22a   : > { %v2278_v40 = vpop.f32.mrf.mxu1 }
 0x22b   : > { %v2267_v52 = vadd.f32 %v2266_v42, %v2214_v41  ;;  %v2273_v13 = vadd.f32 %v2272_v28, %v2220_v2  ;;  %v2277_v61 = vadd.f32 %v2276_v32, %v2224_v8  ;;  %v2279_v47 = vadd.f32 %v2278_v40, %v2226_v23  ;;  %v5432_v2 = vld [vmem:[#allocation8 + $0x4e0] ss:$20 sps:$4 sm:$0xff]  }
 0x22c   : > { %v5440_v8 = vld [vmem:[#allocation8 + $0x494] ss:$20 sps:$4 sm:$0xff]  }
 0x22d   : > { %v5452_v23 = vld [vmem:[#allocation8 + $0x3f4] ss:$20 sps:$4 sm:$0xff]  }
 0x22f   : > { %3715 = vmatmul.mubr.bf16.gmra.mxu0 %v6115_v0  ;;  %v2263_v0 = vadd.f32 %v2262_v37, %v2210_v38 }
 0x237   : > { %v2315_v44 = vpop.f32.mrf.mxu0 }
 0x238   : > { %v2368_v45 = vpop.f32.mrf.mxu1  ;;  %v2316_v56 = vadd.f32 %v2315_v44, %v2263_v0  ;;  %v5419_v0 = vld [vmem:[#allocation8 + $0x32c] ss:$20 sps:$4 sm:$0xff]  }
 0x239   : > { %v2317_v50 = vpop.f32.mrf.mxu0 }
 0x23a   : > { %v2370_v51 = vpop.f32.mrf.mxu1  ;;  %v2318_v55 = vadd.f32 %v2317_v50, %v2265_v36  ;;  %v2369_v15 = vadd.f32 %v2368_v45, %v2316_v56  ;;  %v5414_v36 = vld [vmem:[#allocation8 + $0x350] ss:$20 sps:$4 sm:$0xff]   ;;  %v5417_v50 = vld [vmem:[#allocation8 + $0x328] ss:$20 sps:$4 sm:$0xff]   ;;  %v5423_v56 = vld [vmem:[#allocation8 + $0x2d8] ss:$20 sps:$4 sm:$0xff]  }
 0x23b   : > { %v2319_v59 = vpop.f32.mrf.mxu0 }
 0x23c   : > { %v2372_v60 = vpop.f32.mrf.mxu1  ;;  %v2320_v1 = vadd.f32 %v2319_v59, %v2267_v52  ;;  %v2371_v9 = vadd.f32 %v2370_v51, %v2318_v55  ;;  %v2389_v24 = vmax.f32 %v2369_v15, 0.0  ;;  %v5422_v51 = vld [vmem:[#allocation8 + $0x304] ss:$20 sps:$4 sm:$0xff]   ;;  %v5420_v52 = vld [vmem:[#allocation8 + $0x300] ss:$20 sps:$4 sm:$0xff]  }
 0x23d   : > { %v2321_v3 = vpop.f32.mrf.mxu0  ;;  %v5425_v55 = vld [vmem:[#allocation8 + $0x2dc] ss:$20 sps:$4 sm:$0xff]   ;;  %v5428_v59 = vld [vmem:[#allocation8 + $0x2b4] ss:$20 sps:$4 sm:$0xff]   ;;  %v5446_v15 = vld [vmem:[#allocation8 + $0x444] ss:$20 sps:$4 sm:$0xff]  }
 0x23e   : > { %v2374_v6 = vpop.f32.mrf.mxu1  ;;  %v2373_v11 = vadd.f32 %v2372_v60, %v2320_v1  ;;  %v2322_v14 = vadd.f32 %v2321_v3, %v2269_v18  ;;  %v2390_v53 = vmax.f32 %v2371_v9, 0.0  ;;  %v5426_v60 = vld [vmem:[#allocation8 + $0x2b0] ss:$20 sps:$4 sm:$0xff]   ;;  %v5431_v18 = vld [vmem:[#allocation8 + $0x28c] ss:$20 sps:$4 sm:$0xff]  }
 0x23f   : > { %v2325_v16 = vpop.f32.mrf.mxu0  ;;  %v5434_v1 = vld [vmem:[#allocation8 + $0x4e4] ss:$20 sps:$4 sm:$0xff]   ;;  %v5437_v3 = vld [vmem:[#allocation8 + $0x4bc] ss:$20 sps:$4 sm:$0xff]  }
 0x240   : > { %v2378_v20 = vpop.f32.mrf.mxu1  ;;  %v2375_v12 = vadd.f32 %v2374_v6, %v2322_v14  ;;  %v2393_v48 = vmax.f32 %v2373_v11, 0.0  ;;  %v2326_v43 = vadd.f32 %v2325_v16, %v2273_v13  ;;  %v5435_v6 = vld [vmem:[#allocation8 + $0x4b8] ss:$20 sps:$4 sm:$0xff]   ;;  %v5438_v9 = vld [vmem:[#allocation8 + $0x490] ss:$20 sps:$4 sm:$0xff]  }
 0x241   : > { %v2327_v58 = vpop.f32.mrf.mxu0  ;;  %v5443_v11 = vld [vmem:[#allocation8 + $0x46c] ss:$20 sps:$4 sm:$0xff]   ;;  %v5441_v14 = vld [vmem:[#allocation8 + $0x468] ss:$20 sps:$4 sm:$0xff]  }
 0x242   : > { %v2380_v21 = vpop.f32.mrf.mxu1  ;;  %v2394_v54 = vmax.f32 %v2375_v12, 0.0  ;;  %v2328_v37 = vadd.f32 %v2327_v58, %v2275_v22  ;;  %v6137_v27 = vpack.c.bf16 %v2393_v48, %v2389_v24  ;;  %v2379_v34 = vadd.f32 %v2378_v20, %v2326_v43  ;;  %v5444_v16 = vld [vmem:[#allocation8 + $0x440] ss:$20 sps:$4 sm:$0xff]   ;;  %v5449_v20 = vld [vmem:[#allocation8 + $0x41c] ss:$20 sps:$4 sm:$0xff]  }
 0x243   : > { %v2329_v4 = vpop.f32.mrf.mxu0  ;;  %v5447_v22 = vld [vmem:[#allocation8 + $0x418] ss:$20 sps:$4 sm:$0xff]   ;;  %v5450_v12 = vld [vmem:[#allocation8 + $0x3f0] ss:$20 sps:$4 sm:$0xff]   ;;  %v5453_v48 = vld [vmem:[#allocation8 + $0x3c8] ss:$20 sps:$4 sm:$0xff]  }
 0x244   : > { %v2382_v7 = vpop.f32.mrf.mxu1  ;;  %v6135_v26 = vpack.c.bf16 %v2394_v54, %v2390_v53  ;;  %v2330_v42 = vadd.f32 %v2329_v4, %v2277_v61  ;;  %v2381_v63 = vadd.f32 %v2380_v21, %v2328_v37  ;;  %v2397_v44 = vmax.f32 %v2379_v34, 0.0  ;;  %v5455_v13 = vld [vmem:[#allocation8 + $0x3cc] ss:$20 sps:$4 sm:$0xff]   ;;  %v5456_v58 = vld [vmem:[#allocation8 + $0x4e8] ss:$20 sps:$4 sm:$0xff]  }
 0x245   : > { %v2331_v49 = vpop.f32.mrf.mxu0  ;;  %v5457_v21 = vld [vmem:[#allocation8 + $0x3a8] ss:$20 sps:$4 sm:$0xff]   ;;  %v5458_v61 = vld [vmem:[#allocation8 + $0x4c0] ss:$20 sps:$4 sm:$0xff]   ;;  %v5460_v54 = vld [vmem:[#allocation8 + $0x498] ss:$20 sps:$4 sm:$0xff]  }
 0x246   : > { %v2384_v28 = vpop.f32.mrf.mxu1  ;;  %v2332_v33 = vadd.f32 %v2331_v49, %v2279_v47  ;;  %v2383_v10 = vadd.f32 %v2382_v7, %v2330_v42  ;;  %3547 = vmatprep.mubr.bf16.mxu1 %v6135_v26  ;;  %v2398_v40 = vmax.f32 %v2381_v63, 0.0  ;;  %v5459_v53 = vld [vmem:[#allocation8 + $0x380] ss:$20 sps:$4 sm:$0xff]   ;;  %v5461_v37 = vld [vmem:[#allocation8 + $0x358] ss:$20 sps:$4 sm:$0xff]  }
 0x247   : > { %3548 = vmatmul.mubr.bf16.vlgmr.msra.gmra.mxu1 %v6137_v27  ;;  %v5462_v24 = vld [vmem:[#allocation8 + $0x470] ss:$20 sps:$4 sm:$0xff]   ;;  %v5464_v4 = vld [vmem:[#allocation8 + $0x448] ss:$20 sps:$4 sm:$0xff]   ;;  %v5466_v47 = vld [vmem:[#allocation8 + $0x420] ss:$20 sps:$4 sm:$0xff]  }
 0x248   : > { %v2385_v32 = vadd.f32 %v2384_v28, %v2332_v33  ;;  %3622 = vmatpush1.bf16.msra.mxu1 %v5408_v25  ;;  %v2401_v38 = vmax.f32 %v2383_v10, 0.0  ;;  %v5463_v43 = vld [vmem:[#allocation8 + $0x330] ss:$20 sps:$4 sm:$0xff]   ;;  %v5465_v7 = vld [vmem:[#allocation8 + $0x308] ss:$20 sps:$4 sm:$0xff]  }
 0x249   : > { %3623 = vmatprep.subr.bf16.mxu1 %v5413_v31  ;;  %v5467_v42 = vld [vmem:[#allocation8 + $0x2e0] ss:$20 sps:$4 sm:$0xff]   ;;  %v5468_v25 = vld [vmem:[#allocation8 + $0x3f8] ss:$20 sps:$4 sm:$0xff]   ;;  %v5470_v28 = vld [vmem:[#allocation8 + $0x3d0] ss:$20 sps:$4 sm:$0xff]  }
 0x24a   : > { %v2402_v41 = vmax.f32 %v2385_v32, 0.0  ;;  %v6143_v46 = vpack.c.bf16 %v2401_v38, %v2397_v44  ;;  %v5469_v49 = vld [vmem:[#allocation8 + $0x2b8] ss:$20 sps:$4 sm:$0xff]   ;;  %v5471_v31 = vld [vmem:[#allocation8 + $0x290] ss:$20 sps:$4 sm:$0xff]  }
 0x24b   : > { %v5473_v63 = vld [vmem:[#allocation10 + $0x38] sm:$0xff]   ;;  %v5474_v33 = vld [vmem:[#allocation10 + $0x70] sm:$0xff]   ;;  %v5476_v34 = vld [vmem:[#allocation10 + $0x68] sm:$0xff]  }
 0x24c   : > { %v6141_v45 = vpack.c.bf16 %v2402_v41, %v2398_v40  ;;  %3624 = vmatpush1.bf16.msra.mxu1 %v5411_v35  ;;  %v5475_v10 = vld [vmem:[#allocation10 + $0x30] sm:$0xff]   ;;  %v5477_v32 = vld [vmem:[#allocation10 + $0x28] sm:$0xff]   ;;  %v5479_v35 = vld [vmem:[#allocation10 + $0x20] sm:$0xff]  }
 0x24d   : > { %3625 = vmatprep.subr.bf16.mxu1 %v5416_v39  ;;  %v5480_v38 = vld [vmem:[#allocation10 + $0x58] sm:$0xff]   ;;  %v5482_v40 = vld [vmem:[#allocation10 + $0x50] sm:$0xff]   ;;  %v5484_v44 = vld [vmem:[#allocation10 + $0x48] sm:$0xff]  }
 0x24e   : > { %3557 = vmatprep.mubr.bf16.mxu1 %v6141_v45  ;;  %v5481_v39 = vld [vmem:[#allocation10 + $0x18] sm:$0xff]   ;;  %v5483_v41 = vld [vmem:[#allocation10 + $0x10] sm:$0xff]  }
 0x24f   : > { %3558 = vmatmul.mubr.bf16.gmra.mxu1 %v6143_v46 }
 0x250   : > { %3626 = vmatpush1.bf16.msra.mxu1 %v5414_v36  ;;  %3653 = vmatprep.mubr.bf16.mxu1 %v6135_v26  ;;  %v5486_v36 = vld [vmem:[#allocation10 + $0x40] sm:$0xff]  }
 0x251   : > { %3627 = vmatprep.subr.bf16.mxu1 %v5419_v0 }
 0x254   : > { %3628 = vmatpush1.bf16.msra.mxu1 %v5417_v50 }
 0x255   : > { %3629 = vmatprep.subr.bf16.mxu1 %v5422_v51 }
 0x258   : > { %3630 = vmatpush1.bf16.msra.mxu1 %v5420_v52 }
 0x259   : > { %3631 = vmatprep.subr.bf16.mxu1 %v5425_v55 }
 0x25c   : > { %3632 = vmatpush1.bf16.msra.mxu1 %v5423_v56 }
 0x25d   : > { %3633 = vmatprep.subr.bf16.mxu1 %v5428_v59 }
 0x260   : > { %3634 = vmatpush1.bf16.msra.mxu1 %v5426_v60 }
 0x261   : > { %3635 = vmatprep.subr.bf16.mxu1 %v5431_v18 }
 0x264   : > { %3636 = vmatpush1.bf16.msra.mxu1 %v5429_v62 }
 0x265   : > { %3637 = vmatprep.subr.bf16.mxu1 %v5434_v1 }
 0x268   : > { %3638 = vmatpush2.bf16.msra.mxu1 %v5432_v2 }
 0x269   : > { %3639 = vmatprep.subr.bf16.mxu1 %v5437_v3 }
 0x26c   : > { %3640 = vmatpush2.bf16.msra.mxu1 %v5435_v6 }
 0x26d   : > { %3641 = vmatprep.subr.bf16.mxu1 %v5440_v8 }
 0x270   : > { %3642 = vmatpush2.bf16.msra.mxu1 %v5438_v9 }
 0x271   : > { %3643 = vmatprep.subr.bf16.mxu1 %v5443_v11 }
 0x274   : > { %3644 = vmatpush2.bf16.msra.mxu1 %v5441_v14  ;;  %v6186_v14 = vld [vmem:[%s6306_s4] sm:$0x1f] }
 0x275   : > { %3645 = vmatprep.subr.bf16.mxu1 %v5446_v15 }
 0x278   : > { %3646 = vmatpush2.bf16.msra.mxu1 %v5444_v16 }
 0x279   : > { %3647 = vmatprep.subr.bf16.mxu1 %v5449_v20  ;;  %v2616_v20 = vrot.slane %v6186_v14, %v673_v30 }
 0x27c   : > { %3648 = vmatpush2.bf16.msra.mxu1 %v5447_v22  ;;  %v2620_v22 = vrot.slane %v6186_v14, %v677_v29 }
 0x27d   : > { %3649 = vmatprep.subr.bf16.mxu1 %v5452_v23 }
 0x280   : > { %3650 = vmatpush2.bf16.msra.mxu1 %v5450_v12 }
 0x281   : > { %3651 = vmatprep.subr.bf16.mxu1 %v5455_v13 }
 0x284   : > { %3652 = vmatpush2.bf16.msra.mxu1 %v5453_v48 }
 0x285   : > { %4696 = vmatprep.subr.bf16.mxu1 %v5456_v58 }
 0x287   : > { %3654 = vmatmul.mubr.bf16.vlgmr.msra.gmra.mxu1 %v6137_v27  ;;  %v6155_v0 = vpop.f32.mrf.mxu0 }
 0x288   : > { %3663 = vmatprep.mubr.bf16.mxu1 %v6141_v45  ;;  %4697 = vmatpush3.bf16.msra.mxu1 %v5457_v21 }
 0x289   : > { %4698 = vmatprep.subr.bf16.mxu1 %v5458_v61  ;;  %v6157_v50 = vpop.f32.mrf.mxu0 }
 0x28b   : > { %v6159_v51 = vpop.f32.mrf.mxu0 }
 0x28c   : > { %4699 = vmatpush3.bf16.msra.mxu1 %v5459_v53 }
 0x28d   : > { %4700 = vmatprep.subr.bf16.mxu1 %v5460_v54  ;;  %v6161_v52 = vpop.f32.mrf.mxu0 }
 0x28f   : > { %3664 = vmatmul.mubr.bf16.gmra.mxu1 %v6143_v46  ;;  %v6163_v55 = vpop.f32.mrf.mxu0 }
 0x290   : > { %4701 = vmatpush3.bf16.msra.mxu1 %v5461_v37  ;;  %3755 = vmatprep.mubr.bf16.mxu1 %v6135_v26  ;;  %v5472_v26 = vld [vmem:[#allocation10 + $0x78] sm:$0xff]  }
 0x291   : > { %4702 = vmatprep.subr.bf16.mxu1 %v5462_v24  ;;  %4724 = vmatprep.subr.bf16.mxu0 %v5472_v26  ;;  %v6167_v59 = vpop.f32.mrf.mxu0 }
 0x292   : > { %4725 = vmatpush3.bf16.msra.mxu0 %v5473_v63 }
 0x293   : > { %4726 = vmatprep.subr.bf16.mxu0 %v5474_v33  ;;  %v6171_v18 = vpop.f32.mrf.mxu0 }
 0x294   : > { %4703 = vmatpush3.bf16.msra.mxu1 %v5463_v43 }
 0x295   : > { %4704 = vmatprep.subr.bf16.mxu1 %v5464_v4  ;;  %v6175_v1 = vpop.f32.mrf.mxu0 }
 0x296   : > { %4727 = vmatpush3.bf16.msra.mxu0 %v5475_v10 }
 0x297   : > { %4728 = vmatprep.subr.bf16.mxu0 %v5476_v34 }
 0x298   : > { %4705 = vmatpush3.bf16.msra.mxu1 %v5465_v7 }
 0x299   : > { %4706 = vmatprep.subr.bf16.mxu1 %v5466_v47 }
 0x29a   : > { %4729 = vmatpush3.bf16.msra.mxu0 %v5477_v32 }
 0x29c   : > { %4707 = vmatpush3.bf16.msra.mxu1 %v5467_v42 }
 0x29d   : > { %4708 = vmatprep.subr.bf16.mxu1 %v5468_v25 }
 0x2a0   : > { %4709 = vmatpush3.bf16.msra.mxu1 %v5469_v49 }
 0x2a1   : > { %4710 = vmatprep.subr.bf16.mxu1 %v5470_v28 }
 0x2a4   : > { %4711 = vmatpush3.bf16.msra.mxu1 %v5471_v31 }
 0x2a5   : > { %4752 = vmatprep.subr.bf16.mxu1 %v5472_v26 }
 0x2a7   : > { %3756 = vmatmul.mubr.bf16.vlgmr.msra.gmra.mxu1 %v6137_v27  ;;  %v5478_v27 = vld [vmem:[#allocation10 + $0x60] sm:$0xff]  }
 0x2a8   : > { %3763 = vmatprep.mubr.bf16.mxu1 %v6141_v45  ;;  %4760 = vmatpush3.bf16.msra.mxu1 %v5473_v63  ;;  %v5485_v45 = vld [vmem:[#allocation10 + $0x8] sm:$0xff]  }
 0x2a9   : > { %4753 = vmatprep.subr.bf16.mxu1 %v5474_v33  ;;  %4730 = vmatprep.subr.bf16.mxu0 %v5478_v27  ;;  %v2612_v33 = vrot.slane %v6186_v14, %v669_v17 }
 0x2aa   : > { %4731 = vmatpush3.bf16.msra.mxu0 %v5479_v35 }
 0x2ab   : > { %4732 = vmatprep.subr.bf16.mxu0 %v5480_v38 }
 0x2ac   : > { %4761 = vmatpush3.bf16.msra.mxu1 %v5475_v10 }
 0x2ad   : > { %4754 = vmatprep.subr.bf16.mxu1 %v5476_v34 }
 0x2ae   : > { %4733 = vmatpush3.bf16.msra.mxu0 %v5481_v39 }
 0x2af   : > { %3764 = vmatmul.mubr.bf16.gmra.mxu1 %v6143_v46  ;;  %4734 = vmatprep.subr.bf16.mxu0 %v5482_v40  ;;  %v5487_v46 = vld [vmem:[#allocation10] sm:$0xff]  }
 0x2b0   : > { %4762 = vmatpush3.bf16.msra.mxu1 %v5477_v32 }
 0x2b1   : > { %4755 = vmatprep.subr.bf16.mxu1 %v5478_v27 }
 0x2b2   : > { %4735 = vmatpush3.bf16.msra.mxu0 %v5483_v41 }
 0x2b3   : > { %4736 = vmatprep.subr.bf16.mxu0 %v5484_v44 }
 0x2b4   : > { %4763 = vmatpush3.bf16.msra.mxu1 %v5479_v35 }
 0x2b5   : > { %4756 = vmatprep.subr.bf16.mxu1 %v5480_v38 }
 0x2b6   : > { %4737 = vmatpush3.bf16.msra.mxu0 %v5485_v45 }
 0x2b7   : > { %4738 = vmatprep.subr.bf16.mxu0 %v5486_v36 }
 0x2b8   : > { %4764 = vmatpush3.bf16.msra.mxu1 %v5481_v39 }
 0x2b9   : > { %4757 = vmatprep.subr.bf16.mxu1 %v5482_v40 }
 0x2ba   : > { %4739 = vmatpush3.bf16.msra.mxu0 %v5487_v46 }
 0x2bc   : > { %4765 = vmatpush3.bf16.msra.mxu1 %v5483_v41 }
 0x2bd   : > { %4758 = vmatprep.subr.bf16.mxu1 %v5484_v44 }
 0x2c0   : > { %4766 = vmatpush3.bf16.msra.mxu1 %v5485_v45  ;;  %v2608_v45 = vrot.slane %v6186_v14, %v665_v19 }
 0x2c1   : > { %4759 = vmatprep.subr.bf16.mxu1 %v5486_v36 }
 0x2c4   : > { %4767 = vmatpush3.bf16.msra.mxu1 %v5487_v46  ;;  %v3499_v46 = vadd.f32 %v6157_v50, %v2612_v33 }
 0x2c7   : > { %v3602_v2 = vpop.f32.mrf.mxu0 }
 0x2c8   : > { %v3603_v13 = vadd.f32 %v3602_v2, %v2616_v20 }
 0x2c9   : > { %v3604_v6 = vpop.f32.mrf.mxu0 }
 0x2ca   : > { %v3605_v58 = vadd.f32 %v3604_v6, %v2620_v22  ;;  %v3501_v6 = vadd.f32 %v6159_v51, %v2608_v45  ;;  %v3497_v51 = vadd.f32 %v6155_v0, %v2608_v45 }
 0x2cb   : > { %v3606_v9 = vpop.f32.mrf.mxu0 }
 0x2cc   : > { %v3607_v54 = vadd.f32 %v3606_v9, %v2616_v20 }
 0x2cd   : > { %v3608_v15 = vpop.f32.mrf.mxu0 }
 0x2ce   : > { %v3609_v4 = vadd.f32 %v3608_v15, %v2620_v22  ;;  %v3503_v15 = vadd.f32 %v6161_v52, %v2612_v33  ;;  %v3509_v52 = vadd.f32 %v6167_v59, %v2612_v33  ;;  %v2623_v59 = vsub.s32 4, %v6084_v5 }
 0x2cf   : > { %v3612_v23 = vpop.f32.mrf.mxu0 }
 0x2d0   : > { %v3613_v29 = vadd.f32 %v3612_v23, %v2616_v20 }
 0x2d1   : > { %v3614_v61 = vpop.f32.mrf.mxu0 }
 0x2d2   : > { %v3615_v31 = vadd.f32 %v3614_v61, %v2620_v22 }
 0x2d3   : > { %v3616_v47 = vpop.f32.mrf.mxu0 }
 0x2d4   : > { %v3617_v32 = vadd.f32 %v3616_v47, %v2616_v20 }
 0x2d5   : > { %v3618_v10 = vpop.f32.mrf.mxu0 }
 0x2d6   : > { %v3619_v40 = vadd.f32 %v3618_v10, %v2620_v22 }
 0x2e7   : > { %v4684_v38 = vpop.f32.mrf.mxu0 }
 0x2e9   : > { %v4685_v9 = vpop.f32.mrf.mxu0 }
 0x2eb   : > { %v4687_v50 = vpop.f32.mrf.mxu0 }
 0x307   : > { %v6165_v56 = vpop.f32.mrf.mxu1 }
 0x309   : > { %v6169_v60 = vpop.f32.mrf.mxu1 }
 0x30a   : > { %v3552_v20 = vadd.f32 %v6169_v60, %v3499_v46 }
 0x30b   : > { %v6173_v62 = vpop.f32.mrf.mxu1 }
 0x30c   : > { %v3554_v23 = vadd.f32 %v6173_v62, %v3501_v6  ;;  %v3511_v62 = vadd.f32 %v6171_v18, %v2608_v45 }
 0x30d   : > { %v6177_v3 = vpop.f32.mrf.mxu1 }
 0x30e   : > { %v3556_v19 = vadd.f32 %v6177_v3, %v3503_v15  ;;  %v3550_v3 = vadd.f32 %v6165_v56, %v3497_v51 }
 0x30f   : > { %v6179_v8 = vpop.f32.mrf.mxu1 }
 0x311   : > { %v6181_v11 = vpop.f32.mrf.mxu1 }
 0x313   : > { %v6188_v16 = vpop.f32.mrf.mxu1 }
 0x314   : > { %v3564_v0 = vadd.f32 %v6188_v16, %v3511_v62  ;;  %v4686_v16 = vadd.f32 %v4685_v9, %v4684_v38 }
 0x315   : > { %v6196_v12 = vpop.f32.mrf.mxu1 }
 0x347   : > { %v3655_v48 = vpop.f32.mrf.mxu1 }
 0x348   : > { %v3656_v21 = vadd.f32 %v3655_v48, %v3603_v13 }
 0x349   : > { %v3657_v53 = vpop.f32.mrf.mxu1 }
 0x34a   : > { %v4635_v37 = vmul.f32 -1.442695, %v3656_v21  ;;  %v3658_v24 = vadd.f32 %v3657_v53, %v3605_v58 }
 0x34b   : > { %v3659_v43 = vpop.f32.mrf.mxu1 }
 0x34c   : > { %v4636_v7 = vmul.f32 -1.442695, %v3658_v24  ;;  %v3660_v30 = vadd.f32 %v3659_v43, %v3607_v54  ;;  %5488 = vpow2.f32 %v4635_v37  ;;  %v4688_v54 = vpop.f32.mrf.mxu0  ;;  %v3513_v37 = vadd.f32 %v6175_v1, %v2612_v33 }
 0x34d   : > { %v3661_v42 = vpop.f32.mrf.mxu1  ;;  %v3562_v24 = vadd.f32 %v6181_v11, %v3509_v52  ;;  %v3507_v1 = vadd.f32 %v6163_v55, %v2608_v45  ;;  %v4689_v33 = vadd.f32 %v4688_v54, %v4687_v50 }
 0x34e   : > { %5490 = vpow2.f32 %v4636_v7  ;;  %v4637_v25 = vmul.f32 -1.442695, %v3660_v30  ;;  %v3662_v49 = vadd.f32 %v3661_v42, %v3609_v4  ;;  %v3566_v7 = vadd.f32 %v6196_v12, %v3513_v37  ;;  %v4690_v30 = vpop.f32.mrf.mxu0 }
 0x34f   : > { %v3665_v28 = vpop.f32.mrf.mxu1  ;;  %v6221_v42 = vrot.slane %v6186_v14, %v2623_v59  ;;  %v3560_v12 = vadd.f32 %v6179_v8, %v3507_v1 }
 0x350   : > { %5492 = vpow2.f32 %v4637_v25  ;;  %v4638_v26 = vmul.f32 -1.442695, %v3662_v49  ;;  %v3666_v63 = vadd.f32 %v3665_v28, %v3613_v29  ;;  %v4691_v25 = vpop.f32.mrf.mxu0  ;;  %v6225_v28 = vand.u32 127, %v663_v57 }
 0x351   : > { %v3667_v34 = vpop.f32.mrf.mxu1  ;;  %v3709_v14 = vadd.f32 %v4686_v16, %v6221_v42  ;;  %v4692_v38 = vadd.f32 %v4691_v25, %v4690_v30 }
 0x352   : > { %5494 = vpow2.f32 %v4638_v26  ;;  %v4639_v27 = vmul.f32 -1.442695, %v3666_v63  ;;  %v3668_v35 = vadd.f32 %v3667_v34, %v3615_v31  ;;  %vm4026_vm0 = vcmp.lt.s32.totalorder %v6225_v28, 2 }
 0x353   : > { %v3669_v39 = vpop.f32.mrf.mxu1  ;;  %vm4067_vm1 = vcmp.lt.s32.totalorder %v6225_v28, 64 }
 0x354   : > { %v4640_v41 = vmul.f32 -1.442695, %v3668_v35  ;;  %v3670_v44 = vadd.f32 %v3669_v39, %v3617_v32  ;;  %5496 = vpow2.f32 %v4639_v27  ;;  %v4693_v32 = vpop.f32.mrf.mxu0 }
 0x355   : > { %v3671_v36 = vpop.f32.mrf.mxu1 }
 0x356   : > { %5498 = vpow2.f32 %v4640_v41  ;;  %v4641_v17 = vmul.f32 -1.442695, %v3670_v44  ;;  %v3672_v2 = vadd.f32 %v3671_v36, %v3619_v40  ;;  %v3712_v41 = vadd.f32 %v4689_v33, %v6221_v42  ;;  %v4694_v46 = vpop.f32.mrf.mxu0 }
 0x357   : > { %v4695_v50 = vadd.f32 %v4694_v46, %v4693_v32 }
 0x358   : > { %5500 = vpow2.f32 %v4641_v17  ;;  %v4642_v22 = vmul.f32 -1.442695, %v3672_v2 }
 0x359   : > { %v5489_v13 = vpop.eup %5488 }
 0x35a   : > { %5502 = vpow2.f32 %v4642_v22  ;;  %v3804_v61 = vadd.f32 1.0, %v5489_v13 }
 0x35b   : > { %v5491_v48 = vpop.eup %5490  ;;  %5504 = vtanh.f32 %v3552_v20 }
 0x35c   : > { %v3805_v58 = vadd.f32 1.0, %v5491_v48  ;;  %5506 = vtanh.f32 %v3554_v23  ;;  %v3717_v23 = vadd.f32 %v4692_v38, %v6221_v42 }
 0x35d   : > { %v5493_v21 = vpop.eup %5492  ;;  %5508 = vtanh.f32 %v3556_v19 }
 0x35e   : > { %v3806_v60 = vadd.f32 1.0, %v5493_v21  ;;  %5510 = vrcp.f32 %v3805_v58 }
 0x35f   : > { %v5495_v53 = vpop.eup %5494 }
 0x360   : > { %5512 = vrcp.f32 %v3806_v60  ;;  %v3807_v43 = vadd.f32 1.0, %v5495_v53 }
 0x361   : > { %5514 = vrcp.f32 %v3804_v61  ;;  %v5497_v4 = vpop.eup %5496 }
 0x362   : > { %5516 = vrcp.f32 %v3807_v43  ;;  %v3808_v11 = vadd.f32 1.0, %v5497_v4 }
 0x363   : > { %v5499_v18 = vpop.eup %5498  ;;  %5518 = vtanh.f32 %v3550_v3 }
 0x364   : > { %5520 = vtanh.f32 %v3562_v24  ;;  %v3809_v56 = vadd.f32 1.0, %v5499_v18  ;;  %v3720_v24 = vadd.f32 %v4695_v50, %v6221_v42 }
 0x365   : > { %v5501_v47 = vpop.eup %5500  ;;  %5522 = vtanh.f32 %v3564_v0 }
 0x366   : > { %5524 = vtanh.f32 %v3566_v7  ;;  %v3810_v29 = vadd.f32 1.0, %v5501_v47 }
 0x367   : > { %v5503_v5 = vpop.eup %5502  ;;  %5526 = vrcp.f32 %v3809_v56  ;;  %v4712_v49 = vpop.f32.mrf.mxu1 }
 0x368   : > { %5528 = vrcp.f32 %v3810_v29  ;;  %v3811_v31 = vadd.f32 1.0, %v5503_v5  ;;  %v5505_v55 = vpop.eup %5504 }
 0x369   : > { %5530 = vrcp.f32 %v3808_v11  ;;  %v4713_v26 = vpop.f32.mrf.mxu1  ;;  %v5507_v63 = vpop.eup %5506 }
 0x36a   : > { %5532 = vrcp.f32 %v3811_v31  ;;  %v4714_v10 = vadd.f32 %v4713_v26, %v4712_v49  ;;  %v5509_v34 = vpop.eup %5508 }
 0x36b   : > { %5534 = vtanh.f32 %v3560_v12  ;;  %v4715_v8 = vpop.f32.mrf.mxu1  ;;  %v5511_v27 = vpop.eup %5510 }
 0x36c   : > { %v3758_v57 = vadd.f32 %v4714_v10, %v3709_v14  ;;  %v3829_v15 = vmul.f32 %v5511_v27, %v5505_v55 }
 0x36d   : > { %v5513_v35 = vpop.eup %5512  ;;  %v4716_v39 = vpop.f32.mrf.mxu1 }
 0x36e   : > { %v5515_v40 = vpop.eup %5514  ;;  %v4717_v44 = vadd.f32 %v4716_v39, %v4715_v8  ;;  %v4027_v45 = vsel %vm4026_vm0, %v3758_v57, -1e+30  ;;  %v3830_v2 = vmul.f32 %v5513_v35, %v5507_v63 }
 0x36f   : > { %v5517_v36 = vpop.eup %5516  ;;  %v4718_v17 = vpop.f32.mrf.mxu1  ;;  %4031 = vmax.xlane.f32.xlu0 %v4027_v45 }
 0x370   : > { %v5519_v6 = vpop.eup %5518  ;;  %v3761_v9 = vadd.f32 %v4717_v44, %v3712_v41  ;;  %v3831_v20 = vmul.f32 %v5517_v36, %v5509_v34  ;;  %v4643_v36 = vld [vmem:[%s6308_s6] ss:$0 sm:$0xff] }
 0x371   : > { %v5521_v22 = vpop.eup %5520  ;;  %v4719_v13 = vpop.f32.mrf.mxu1  ;;  %v3828_v19 = vmul.f32 %v5519_v6, %v5515_v40 }
 0x372   : > { %v5523_v48 = vpop.eup %5522  ;;  %v4720_v58 = vadd.f32 %v4719_v13, %v4718_v17  ;;  %v4028_v21 = vsel %vm4026_vm0, %v3761_v9, -1e+30  ;;  %v3837_v51 = vpack.c.bf16 %v3831_v20, %v3829_v15 }
 0x373   : > { %v5525_v61 = vpop.eup %5524  ;;  %v4721_v52 = vpop.f32.mrf.mxu1  ;;  %4033 = vmax.xlane.f32.xlu0 %v4028_v21  ;;  %v3836_v60 = vpack.c.bf16 %v3830_v2, %v3828_v19 }
 0x374   : > { %v5527_v53 = vpop.eup %5526  ;;  %4007 = vmatprep.mubr.bf16.mxu0 %v3837_v51  ;;  %v3766_v62 = vadd.f32 %v4720_v58, %v3717_v23 }
 0x375   : > { %v5529_v54 = vpop.eup %5528  ;;  %v4722_v3 = vpop.f32.mrf.mxu1  ;;  %4008 = vmatmul.mubr.bf16.vlgmr.msra.gmra.mxu0 %v3836_v60  ;;  %v3833_v30 = vmul.f32 %v5527_v53, %v5521_v22 }
 0x376   : > { %v5531_v37 = vpop.eup %5530  ;;  %v4723_v43 = vadd.f32 %v4722_v3, %v4721_v52  ;;  %v4029_v0 = vsel %vm4026_vm0, %v3766_v62, -1e+30  ;;  %v3834_v59 = vmul.f32 %v5529_v54, %v5523_v48 }
 0x377   : > { %v5533_v4 = vpop.eup %5532  ;;  %4035 = vmax.xlane.f32.xlu1 %v4029_v0 }
 0x378   : > { %v5535_v7 = vpop.eup %5534  ;;  %v3769_v18 = vadd.f32 %v4723_v43, %v3720_v24  ;;  %v3835_v56 = vmul.f32 %v5533_v4, %v5525_v61 }
 0x379   : > { %v3832_v47 = vmul.f32 %v5535_v7, %v5531_v37 }
 0x37a   : > { %v4030_v1 = vsel %vm4026_vm0, %v3769_v18, -1e+30  ;;  %v3839_v11 = vpack.c.bf16 %v3835_v56, %v3833_v30 }
 0x37b   : > { %4037 = vmax.xlane.f32.xlu1 %v4030_v1  ;;  %v3838_v16 = vpack.c.bf16 %v3834_v59, %v3832_v47 }
 0x37c   : > { %4015 = vmatprep.mubr.bf16.mxu1 %v3839_v11 }
 0x37d   : > { %4016 = vmatmul.mubr.bf16.vlgmr.msra.gmra.mxu1 %v3838_v16 }
 0x3f8   : > { %v4032_v42 = vpop.xlane.xlu0 %4031 }
 0x3f9   : > { %v4039_v29 = vsub.f32 %v4027_v45, %v4032_v42 }
 0x3fb   : > { %v4043_v5 = vmul.f32 1.442695, %v4039_v29 }
 0x3fc   : > { %v4034_v25 = vpop.xlane.xlu0 %4033 }
 0x3fd   : > { %5536 = vpow2.f32 %v4043_v5  ;;  %v4040_v12 = vsub.f32 %v4028_v21, %v4034_v25 }
 0x3ff   : > { %v4045_v49 = vmul.f32 1.442695, %v4040_v12 }
 0x400   : > { %v4036_v31 = vpop.xlane.xlu1 %4035 }
 0x401   : > { %5538 = vpow2.f32 %v4045_v49  ;;  %v4041_v55 = vsub.f32 %v4029_v0, %v4036_v31 }
 0x403   : > { %v4047_v26 = vmul.f32 1.442695, %v4041_v55 }
 0x404   : > { %v4038_v63 = vpop.xlane.xlu1 %4037 }
 0x405   : > { %5540 = vpow2.f32 %v4047_v26  ;;  %v4042_v14 = vsub.f32 %v4030_v1, %v4038_v63 }
 0x407   : > { %v4049_v33 = vmul.f32 1.442695, %v4042_v14 }
 0x409   : > { %5542 = vpow2.f32 %v4049_v33 }
 0x40a   : > { %v5537_v10 = vpop.eup %5536 }
 0x40b   : > { %4051 = vadd.xlane.f32.xlu0 %v5537_v10 }
 0x40e   : > { %v5539_v34 = vpop.eup %5538 }
 0x40f   : > { %4053 = vadd.xlane.f32.xlu1 %v5539_v34 }
 0x412   : > { %v5541_v32 = vpop.eup %5540 }
 0x413   : > { %4055 = vadd.xlane.f32.xlu0 %v5541_v32 }
 0x416   : > { %v5543_v8 = vpop.eup %5542 }
 0x417   : > { %4057 = vadd.xlane.f32.xlu1 %v5543_v8 }
 0x435   : > { %v4740_v27 = vpop.f32.mrf.mxu0 }
 0x437   : > { %v4741_v35 = vpop.f32.mrf.mxu0 }
 0x438   : > { %v4742_v44 = vadd.f32 %v4741_v35, %v4740_v27 }
 0x439   : > { %v4743_v39 = vpop.f32.mrf.mxu0 }
 0x43a   : > { %v4010_v6 = vadd.f32 %v4742_v44, %v4643_v36 }
 0x43b   : > { %v4744_v45 = vpop.f32.mrf.mxu0 }
 0x43c   : > { %v4745_v9 = vadd.f32 %v4744_v45, %v4743_v39 }
 0x43d   : > { %v4746_v40 = vpop.f32.mrf.mxu1 }
 0x43e   : > { %v4013_v13 = vadd.f32 %v4745_v9, %v4643_v36 }
 0x43f   : > { %v4747_v46 = vpop.f32.mrf.mxu1 }
 0x440   : > { %v4748_v19 = vadd.f32 %v4747_v46, %v4746_v40 }
 0x441   : > { %v4749_v20 = vpop.f32.mrf.mxu1 }
 0x442   : > { %v4018_v51 = vadd.f32 %v4748_v19, %v4643_v36 }
 0x443   : > { %v4750_v50 = vpop.f32.mrf.mxu1 }
 0x444   : > { %v4751_v61 = vadd.f32 %v4750_v50, %v4749_v20 }
 0x446   : > { %v4021_v62 = vadd.f32 %v4751_v61, %v4643_v36 }
 0x494   : > { %v4052_v57 = vpop.xlane.xlu0 %4051 }
 0x495   : > { %5544 = vrcp.f32 %v4052_v57 }
 0x498   : > { %v4054_v38 = vpop.xlane.xlu1 %4053 }
 0x499   : > { %5546 = vrcp.f32 %v4054_v38 }
 0x49c   : > { %v4056_v41 = vpop.xlane.xlu0 %4055 }
 0x49d   : > { %5548 = vrcp.f32 %v4056_v41 }
 0x4a0   : > { %v4058_v17 = vpop.xlane.xlu1 %4057 }
 0x4a1   : > { %5550 = vrcp.f32 %v4058_v17 }
 0x4a2   : > { %v5545_v2 = vpop.eup %5544 }
 0x4a3   : > { %v4060_v15 = vmul.f32 %v5545_v2, %v5537_v10 }
 0x4a5   : > { %v4068_v22 = vsel %vm4067_vm1, %v4060_v15, %v4010_v6 }
 0x4a6   : > { %v5547_v23 = vpop.eup %5546  ;;  %4072 = vst [vmem:[%s353_s29] sm:$0xff] %v4068_v22 }
 0x4a7   : > { %v4062_v48 = vmul.f32 %v5547_v23, %v5539_v34 }
 0x4a9   : > { %v4069_v58 = vsel %vm4067_vm1, %v4062_v48, %v4013_v13 }
 0x4aa   : > { %v5549_v21 = vpop.eup %5548  ;;  %4073 = vst [vmem:[%s353_s29 + $0x8] sm:$0xff] %v4069_v58 }
 0x4ab   : > { %v4064_v52 = vmul.f32 %v5549_v21, %v5541_v32 }
 0x4ad   : > { %v4070_v60 = vsel %vm4067_vm1, %v4064_v52, %v4018_v51 }
 0x4ae   : > { %v5551_v53 = vpop.eup %5550  ;;  %4074 = vst [vmem:[%s353_s29 + $0x10] sm:$0xff] %v4070_v60 }
 0x4af   : > { %v4066_v54 = vmul.f32 %v5551_v53, %v5543_v8 }
 0x4b1   : > { %v4071_v3 = vsel %vm4067_vm1, %v4066_v54, %v4021_v62 }
 0x4b2   : > { %4075 = vst [vmem:[%s353_s29 + $0x18] sm:$0xff] %v4071_v3 }
 0x4b3   : > { %5697 = shalt.err (!%p5694_p5)
}
 0x4b4   : > { %s5698_s9 = scalar_lea.hbm %s6255_s14, 512  ;;  %s5702_s22 = scalar_lea.hbm %s6309_s7, 1024 }
 0x4b5   : > { %p5699_p0 = scmp.ne.s32.totalorder %s6255_s14, %s5698_s9  ;;  %p5703_p10 = scmp.lt.s32.totalorder %s6255_s14, %s6309_s7 }
 0x4b6   : > { %p5704_p1 = scmp.lt.s32.totalorder %s5702_s22, %s5698_s9 }
 0x4b7   : > { %p5700_p7 = pnand %p5699_p0, %p6331_p8 }
 0x4b8   : > { %p5705_p2 = por %p5704_p1, %p5703_p10 }
 0x4b9   : > { %p5701_p11 = pneg %p5700_p7 }
 0x4bb   : > { %p5706_p4 = pnand %p5705_p2, %p5701_p11 }
 0x4bd   : > { %5709 = shalt.err (!%p5706_p4)
}
 0x4be   : > { %s5771_s15 = smov 128   ;;  %s5772_s10 = smov 8  }
 0x4bf   : > { %4786 = dma.vmem_to_hbm [thread:$0]  (%p6331_p8), %s6257_s13, 512, %s6255_s14, %s4077_s28, %s5771_s15, %s5771_s15, %s5772_s10  }
 0x4c0 PF: > { %s4105_s1 = sand.u32 1, %s5744_s24   ;;  %p6332_p12 = scmp.ne.s32.totalorder %s6317_s8, 0 }
 0x4c1   : > { %p6333_p6 = scmp.ge.s32.totalorder %s5756_s27, 2  ;;  %s4106_s16 = scalar_lea.sflag [#allocation4], %s4105_s1 }
 0x4c3   : > { %p4806_p3 = pnand %p6333_p6, %p6332_p12 }
 0x4c5   : > { %p4807_p9 = pneg %p4806_p3 }
 0x4c7   : > { %5739 = dma.done.wait (%p4807_p9), %s4106_s16, 512  }
 0x4c8   : > { %5741 = vsyncadd (%p4807_p9), %s4106_s16, 4294966784  ;;  %p22_p13 = scmp.ge.s32.totalorder %s5903_s23, 4   ;;  %s6334_s24 = smov %s5748_s25 }
 0x4c9   : > { %s6335_s25 = smov %s5752_s26  ;;  %s6336_s26 = smov %s5912_s11 }
 0x4ca   : > { %s6337_s27 = smov %s5903_s23  ;;  %24 = sbr.rel (!%p22_p13) target bundleno = 9 (0x9), region = 109 }
 0x4cf   :  { %4111 = vsyncpa [#allocation3], 1 }
 0x4d0   :  { %4113 = vsyncpa [#allocation3 + $0x1], 1 }
 0x4d1   :  { %4114 = vsyncpa [#allocation6], 1 }
 0x4d2   :  { %4115 = vsyncpa [#allocation9], 1 }
 0x4d3   :  { %4116 = vsyncpa [#allocation4], 1 }
 0x4d4   :  { %4118 = vsyncpa [#allocation4 + $0x1], 1 }

</bundles_post_ra>
